<compile_context>
chip_gen: v7x
topology: tpu7x:2x2x1
jax: 0.10.0
libtpu: 0.0.40
codegen_flags: <defaults>
</compile_context>

<pallas_src>
import functools
import math

import jax
import jax.numpy as jnp
from jax import lax
from jax.experimental import pallas as pl
from jax.experimental.pallas import tpu as pltpu


_NEG_INF = -1e30  # big finite negative: avoids (-inf) - (-inf) = NaN corner cases


def _round_up(x, m):
    return (x + m - 1) // m * m


def _pad2d(a, rows, cols):
    a = jnp.asarray(a, jnp.float32)
    return jnp.pad(a, ((0, rows - a.shape[0]), (0, cols - a.shape[1])))


def _masked_layernorm(x, gamma, beta, d_actual, d_padded, eps=1e-5):
    """PyTorch LayerNorm over the last dim; statistics computed only over the first
    d_actual features.  Assumes padded feature columns of x (and gamma/beta) are zero."""
    mean = jnp.sum(x, axis=-1, keepdims=True) * (1.0 / d_actual)
    if d_actual == d_padded:
        centered = x - mean
    else:
        feat = lax.broadcasted_iota(jnp.int32, x.shape, 1)
        centered = jnp.where(feat < d_actual, x - mean, 0.0)
    var = jnp.sum(centered * centered, axis=-1, keepdims=True) * (1.0 / d_actual)
    inv = lax.rsqrt(var + eps)
    return (x - mean) * inv * gamma + beta


def _transformer_layer_kernel(
    xq_ref, xkv_ref,
    wq_ref, bq_ref, wk_ref, bk_ref, wv_ref, bv_ref,
    w1_ref, b1_ref, w2_ref, b2_ref,
    g1_ref, be1_ref, g2_ref, be2_ref,
    o_ref,
    q_sc, m_sc, l_sc, acc_sc,
    *, d_model, seq_len, block_kv, compute_dtype,
):
    kv_i = pl.program_id(1)
    d_pad = acc_sc.shape[-1]
    f32 = jnp.float32
    cdt = compute_dtype

    # ---- per-q-tile init: compute (pre-scaled) Q once, reset accumulators ----
    @pl.when(kv_i == 0)
    def _():
        xq = xq_ref[...].astype(cdt)
        q = jnp.dot(xq, wq_ref[...], preferred_element_type=f32) + bq_ref[...]
        q_sc[...] = q * (1.0 / math.sqrt(d_model))   # fold softmax scale into q
        m_sc[...] = jnp.full(m_sc.shape, _NEG_INF, f32)
        l_sc[...] = jnp.zeros(l_sc.shape, f32)
        acc_sc[...] = jnp.zeros(acc_sc.shape, f32)

    # ---- K/V projection for this kv tile ----
    xkv = xkv_ref[...].astype(cdt)
    k = jnp.dot(xkv, wk_ref[...], preferred_element_type=f32) + bk_ref[...]
    v = jnp.dot(xkv, wv_ref[...], preferred_element_type=f32) + bv_ref[...]

    # ---- scores = q @ k^T (contraction on last axis of both: no transpose copy) ----
    s = lax.dot_general(
        q_sc[...].astype(cdt), k.astype(cdt),
        dimension_numbers=(((1,), (1,)), ((), ())),
        preferred_element_type=f32)                    # (block_q, block_kv)

    # mask padded key positions (sequence padding)
    col = lax.broadcasted_iota(jnp.int32, s.shape, 1) + kv_i * block_kv
    s = jnp.where(col < seq_len, s, _NEG_INF)

    # ---- online softmax update ----
    m_prev = m_sc[...]
    m_new = jnp.maximum(m_prev, jnp.max(s, axis=-1, keepdims=True))
    alpha = jnp.exp(m_prev - m_new)
    p = jnp.exp(s - m_new)
    l_sc[...] = alpha * l_sc[...] + jnp.sum(p, axis=-1, keepdims=True)
    acc_sc[...] = alpha * acc_sc[...] + jnp.dot(
        p.astype(cdt), v.astype(cdt), preferred_element_type=f32)
    m_sc[...] = m_new

    # ---- finalize: normalize, residual+LN1, FFN, residual+LN2, store tile ----
    @pl.when(kv_i == pl.num_programs(1) - 1)
    def _():
        xq = xq_ref[...].astype(f32)
        attn = acc_sc[...] * pl.reciprocal(l_sc[...], approx=True)
        out1 = _masked_layernorm(attn + xq, g1_ref[...], be1_ref[...], d_model, d_pad)
        h = jnp.dot(out1.astype(cdt), w1_ref[...], preferred_element_type=f32) + b1_ref[...]
        h = jnp.maximum(h, 0.0)
        ff = jnp.dot(h.astype(cdt), w2_ref[...], preferred_element_type=f32) + b2_ref[...]
        out2 = _masked_layernorm(ff + out1, g2_ref[...], be2_ref[...], d_model, d_pad)
        o_ref[...] = out2.astype(o_ref.dtype)


def transformer_layer(x, params, *, block_q=256, block_kv=256,
                      compute_dtype=jnp.bfloat16):
    """x: (seq, d_model) f32.  params: PyTorch nn.Linear layout (out, in) + 1-D biases/LN."""
    seq, d_model = x.shape
    d_internal = params["W1"].shape[0]

    # --- lane/sublane-aligned padded dims and tiles ---
    d_pad = _round_up(d_model, 128)
    h_pad = _round_up(d_internal, 128)
    bq = _round_up(min(block_q, _round_up(seq, 8)), 8)
    bkv = _round_up(min(block_kv, _round_up(seq, 8)), 8)
    tile = bq * bkv // math.gcd(bq, bkv)                      # lcm: both block sizes divide seq_pad
    seq_pad = _round_up(seq, tile)
    n_q, n_kv = seq_pad // bq, seq_pad // bkv

    # --- glue: transpose to (in, out), zero-pad, cast weights to compute dtype ---
    def w_t(w, rows, cols):
        return _pad2d(jnp.asarray(w, jnp.float32).T, rows, cols).astype(compute_dtype)

    def vec(b, cols):
        return _pad2d(jnp.asarray(b, jnp.float32).reshape(1, -1), 1, cols)

    xp = _pad2d(x, seq_pad, d_pad)

    args = (
        xp, xp,                                               # q-stream / kv-stream of x
        w_t(params["Wq"], d_pad, d_pad), vec(params["bq"], d_pad),
        w_t(params["Wk"], d_pad, d_pad), vec(params["bk"], d_pad),
        w_t(params["Wv"], d_pad, d_pad), vec(params["bv"], d_pad),
        w_t(params["W1"], d_pad, h_pad), vec(params["b1"], h_pad),
        w_t(params["W2"], h_pad, d_pad), vec(params["b2"], d_pad),
        vec(params["g1"], d_pad), vec(params["be1"], d_pad),
        vec(params["g2"], d_pad), vec(params["be2"], d_pad),
    )

    def resident(shape):                                      # VMEM-resident across the grid
        return pl.BlockSpec(shape, lambda i, j: (0, 0))

    in_specs = [
        pl.BlockSpec((bq, d_pad), lambda i, j: (i, 0)),       # x tile for queries
        pl.BlockSpec((bkv, d_pad), lambda i, j: (j, 0)),      # x tile for keys/values
        resident((d_pad, d_pad)), resident((1, d_pad)),       # Wq, bq
        resident((d_pad, d_pad)), resident((1, d_pad)),       # Wk, bk
        resident((d_pad, d_pad)), resident((1, d_pad)),       # Wv, bv
        resident((d_pad, h_pad)), resident((1, h_pad)),       # W1, b1
        resident((h_pad, d_pad)), resident((1, d_pad)),       # W2, b2
        resident((1, d_pad)), resident((1, d_pad)),           # g1, be1
        resident((1, d_pad)), resident((1, d_pad)),           # g2, be2
    ]

    kernel = functools.partial(
        _transformer_layer_kernel,
        d_model=d_model, seq_len=seq, block_kv=bkv, compute_dtype=compute_dtype)

    wbytes = sum(int(a.size) * a.dtype.itemsize for a in args[2:])
    cost = pl.CostEstimate(
        flops=int(2 * seq_pad * d_pad * (d_pad * (1 + 2 * n_q) + 2 * seq_pad)
                  + 4 * seq_pad * d_pad * h_pad),
        transcendentals=int(seq_pad * seq_pad + 2 * seq_pad * n_kv),
        bytes_accessed=int(2 * xp.size * 4 + seq_pad * d_pad * 4 + wbytes),
    )

    out = pl.pallas_call(
        kernel,
        grid=(n_q, n_kv),
        in_specs=in_specs,
        out_specs=pl.BlockSpec((bq, d_pad), lambda i, j: (i, 0)),
        out_shape=jax.ShapeDtypeStruct((seq_pad, d_pad), jnp.float32),
        scratch_shapes=[
            pltpu.VMEM((bq, d_pad), jnp.float32),             # pre-scaled Q
            pltpu.VMEM((bq, 1), jnp.float32),                 # running max m
            pltpu.VMEM((bq, 1), jnp.float32),                 # running denom l
            pltpu.VMEM((bq, d_pad), jnp.float32),             # output accumulator
        ],
        compiler_params=pltpu.CompilerParams(
            dimension_semantics=("parallel", "arbitrary"),
            vmem_limit_bytes=64 * 1024 * 1024),
        cost_estimate=cost,
    )(*args)

    return out[:seq, :d_model]


def _reference(x, params):
    """Pure-JAX f32 reference matching the PyTorch forward."""
    d_model = x.shape[-1]

    def lin(x, w, b):
        return x @ w.T + b

    q = lin(x, params["Wq"], params["bq"])
    k = lin(x, params["Wk"], params["bk"])
    v = lin(x, params["Wv"], params["bv"])
    scores = (q @ k.T) / jnp.sqrt(jnp.float32(d_model))
    w = jax.nn.softmax(scores, axis=-1)
    attn = w @ v

    def ln(x, g, b, eps=1e-5):
        mu = jnp.mean(x, axis=-1, keepdims=True)
        var = jnp.mean((x - mu) ** 2, axis=-1, keepdims=True)
        return (x - mu) / jnp.sqrt(var + eps) * g + b

    out1 = ln(attn + x, params["g1"], params["be1"])
    h = jnp.maximum(lin(out1, params["W1"], params["b1"]), 0.0)
    ff = lin(h, params["W2"], params["b2"])
    return ln(ff + out1, params["g2"], params["be2"])


if __name__ == "__main__":
    d_model, d_internal = 32, 16

    key = jax.random.PRNGKey(0)
    keys = jax.random.split(key, 12)

    def init_linear(kw, kb, out_dim, in_dim):
        bound = 1.0 / math.sqrt(in_dim)
        w = jax.random.uniform(kw, (out_dim, in_dim), jnp.float32, -bound, bound)
        b = jax.random.uniform(kb, (out_dim,), jnp.float32, -bound, bound)
        return w, b

    Wq, bq = init_linear(keys[0], keys[1], d_model, d_model)
    Wk, bk = init_linear(keys[2], keys[3], d_model, d_model)
    Wv, bv = init_linear(keys[4], keys[5], d_model, d_model)
    W1, b1 = init_linear(keys[6], keys[7], d_internal, d_model)
    W2, b2 = init_linear(keys[8], keys[9], d_model, d_internal)

    params = dict(
        Wq=Wq, bq=bq, Wk=Wk, bk=bk, Wv=Wv, bv=bv,
        W1=W1, b1=b1, W2=W2, b2=b2,
        g1=jnp.ones((d_model,), jnp.float32), be1=jnp.zeros((d_model,), jnp.float32),
        g2=jnp.ones((d_model,), jnp.float32), be2=jnp.zeros((d_model,), jnp.float32),
    )

    # --- Test 1: spec-sized input (seq=8, d_model=32), f32 compute path ---
    x1 = jax.random.normal(keys[10], (8, d_model), jnp.float32)
    out1 = jax.block_until_ready(
        transformer_layer(x1, params, compute_dtype=jnp.float32))
    ref1 = _reference(x1, params)
    err1 = float(jnp.max(jnp.abs(out1 - ref1)))
    assert out1.shape == (8, d_model)
    assert jnp.allclose(out1, ref1, atol=1e-2, rtol=1e-2), err1

    # --- Test 2: multi-tile flash path (3x3 grid), seq padding + kv masking, bf16 weights ---
    x2 = jax.random.normal(keys[11], (20, d_model), jnp.float32)
    out2 = jax.block_until_ready(
        transformer_layer(x2, params, block_q=8, block_kv=8,
                          compute_dtype=jnp.bfloat16))
    ref2 = _reference(x2, params)
    err2 = float(jnp.max(jnp.abs(out2 - ref2)))
    assert out2.shape == (20, d_model)
    assert jnp.allclose(out2, ref2, atol=1e-1, rtol=1e-1), err2

    print("KERNEL_OK")
</pallas_src>

<mosaic_0001>
module attributes {stable_mosaic.version = 11 : i64} {
  func.func @_transformer_layer_kernel(%arg0: i32, %arg1: i32, %arg2: memref<8x128xf32, #tpu.memory_space<vmem>>, %arg3: memref<8x128xf32, #tpu.memory_space<vmem>>, %arg4: memref<128x128xf32, #tpu.memory_space<vmem>>, %arg5: memref<1x128xf32, #tpu.memory_space<vmem>>, %arg6: memref<128x128xf32, #tpu.memory_space<vmem>>, %arg7: memref<1x128xf32, #tpu.memory_space<vmem>>, %arg8: memref<128x128xf32, #tpu.memory_space<vmem>>, %arg9: memref<1x128xf32, #tpu.memory_space<vmem>>, %arg10: memref<128x128xf32, #tpu.memory_space<vmem>>, %arg11: memref<1x128xf32, #tpu.memory_space<vmem>>, %arg12: memref<128x128xf32, #tpu.memory_space<vmem>>, %arg13: memref<1x128xf32, #tpu.memory_space<vmem>>, %arg14: memref<1x128xf32, #tpu.memory_space<vmem>>, %arg15: memref<1x128xf32, #tpu.memory_space<vmem>>, %arg16: memref<1x128xf32, #tpu.memory_space<vmem>>, %arg17: memref<1x128xf32, #tpu.memory_space<vmem>>, %arg18: memref<8x128xf32, #tpu.memory_space<vmem>>, %arg19: memref<8x128xf32, #tpu.memory_space<vmem>>, %arg20: memref<8x1xf32, #tpu.memory_space<vmem>>, %arg21: memref<8x1xf32, #tpu.memory_space<vmem>>, %arg22: memref<8x128xf32, #tpu.memory_space<vmem>>) attributes {dimension_semantics = [#tpu.dimension_semantics<parallel>, #tpu.dimension_semantics<arbitrary>], iteration_bounds = array<i64: 1, 1>, scalar_prefetch = 0 : i64, scratch_operands = 4 : i64, tpu.core_type = #tpu.core_type<tc>, window_params = [{transform_indices = @transform_0, window_bounds = array<i64: 8, 128>}, {transform_indices = @transform_1, window_bounds = array<i64: 8, 128>}, {pipeline_mode = #tpu.pipeline_mode<synchronous>, transform_indices = @transform_2, window_bounds = array<i64: 128, 128>}, {pipeline_mode = #tpu.pipeline_mode<synchronous>, transform_indices = @transform_3, window_bounds = array<i64: 1, 128>}, {pipeline_mode = #tpu.pipeline_mode<synchronous>, transform_indices = @transform_4, window_bounds = array<i64: 128, 128>}, {pipeline_mode = #tpu.pipeline_mode<synchronous>, transform_indices = @transform_5, window_bounds = array<i64: 1, 128>}, {pipeline_mode = #tpu.pipeline_mode<synchronous>, transform_indices = @transform_6, window_bounds = array<i64: 128, 128>}, {pipeline_mode = #tpu.pipeline_mode<synchronous>, transform_indices = @transform_7, window_bounds = array<i64: 1, 128>}, {pipeline_mode = #tpu.pipeline_mode<synchronous>, transform_indices = @transform_8, window_bounds = array<i64: 128, 128>}, {pipeline_mode = #tpu.pipeline_mode<synchronous>, transform_indices = @transform_9, window_bounds = array<i64: 1, 128>}, {pipeline_mode = #tpu.pipeline_mode<synchronous>, transform_indices = @transform_10, window_bounds = array<i64: 128, 128>}, {pipeline_mode = #tpu.pipeline_mode<synchronous>, transform_indices = @transform_11, window_bounds = array<i64: 1, 128>}, {pipeline_mode = #tpu.pipeline_mode<synchronous>, transform_indices = @transform_12, window_bounds = array<i64: 1, 128>}, {pipeline_mode = #tpu.pipeline_mode<synchronous>, transform_indices = @transform_13, window_bounds = array<i64: 1, 128>}, {pipeline_mode = #tpu.pipeline_mode<synchronous>, transform_indices = @transform_14, window_bounds = array<i64: 1, 128>}, {pipeline_mode = #tpu.pipeline_mode<synchronous>, transform_indices = @transform_15, window_bounds = array<i64: 1, 128>}, {transform_indices = @transform_16, window_bounds = array<i64: 8, 128>}]} {
    %c0_i32 = arith.constant 0 : i32
    %0 = arith.cmpi eq, %arg1, %c0_i32 : i32
    %1 = arith.extui %0 : i1 to i32
    %c0_i32_0 = arith.constant 0 : i32
    %2 = arith.cmpi ne, %1, %c0_i32_0 : i32
    scf.if %2 {
      %c0_33 = arith.constant 0 : index
      %c0_34 = arith.constant 0 : index
      %49 = vector.load %arg2[%c0_33, %c0_34] : memref<8x128xf32, #tpu.memory_space<vmem>>, vector<8x128xf32>
      %c0_35 = arith.constant 0 : index
      %c0_36 = arith.constant 0 : index
      %50 = vector.load %arg4[%c0_35, %c0_36] : memref<128x128xf32, #tpu.memory_space<vmem>>, vector<128x128xf32>
      %cst_37 = arith.constant dense<0.000000e+00> : vector<8x128xf32>
      %51 = tpu.matmul %49, %50, %cst_37 {dimension_numbers = #tpu.dot_dimension_numbers<[1], [0], [0], [1], [0, 0, 1, 1], [], []>} : vector<8x128xf32>, vector<128x128xf32>, vector<8x128xf32> -> vector<8x128xf32>
      %c0_38 = arith.constant 0 : index
      %c0_39 = arith.constant 0 : index
      %52 = vector.load %arg5[%c0_38, %c0_39] : memref<1x128xf32, #tpu.memory_space<vmem>>, vector<1x128xf32>
      %53 = vector.broadcast %52 : vector<1x128xf32> to vector<8x128xf32>
      %54 = arith.addf %51, %53 : vector<8x128xf32>
      %cst_40 = arith.constant 0.176776692 : f32
      %55 = vector.broadcast %cst_40 : f32 to vector<8x128xf32>
      %56 = arith.mulf %54, %55 : vector<8x128xf32>
      %c0_41 = arith.constant 0 : index
      %c0_42 = arith.constant 0 : index
      %57 = vector.load %arg19[%c0_41, %c0_42] : memref<8x128xf32, #tpu.memory_space<vmem>>, vector<8x128xf32>
      tpu.vector_store %arg19[%c0_41, %c0_42], %56 {strides = array<i32>} : memref<8x128xf32, #tpu.memory_space<vmem>>, vector<8x128xf32>,
      %cst_43 = arith.constant -1.000000e+30 : f32
      %58 = vector.broadcast %cst_43 : f32 to vector<8x1xf32>
      %c0_44 = arith.constant 0 : index
      %c0_45 = arith.constant 0 : index
      %59 = vector.load %arg20[%c0_44, %c0_45] : memref<8x1xf32, #tpu.memory_space<vmem>>, vector<8x1xf32>
      tpu.vector_store %arg20[%c0_44, %c0_45], %58 {strides = array<i32>} : memref<8x1xf32, #tpu.memory_space<vmem>>, vector<8x1xf32>,
      %cst_46 = arith.constant 0.000000e+00 : f32
      %60 = vector.broadcast %cst_46 : f32 to vector<8x1xf32>
      %c0_47 = arith.constant 0 : index
      %c0_48 = arith.constant 0 : index
      %61 = vector.load %arg21[%c0_47, %c0_48] : memref<8x1xf32, #tpu.memory_space<vmem>>, vector<8x1xf32>
      tpu.vector_store %arg21[%c0_47, %c0_48], %60 {strides = array<i32>} : memref<8x1xf32, #tpu.memory_space<vmem>>, vector<8x1xf32>,
      %cst_49 = arith.constant 0.000000e+00 : f32
      %62 = vector.broadcast %cst_49 : f32 to vector<8x128xf32>
      %c0_50 = arith.constant 0 : index
      %c0_51 = arith.constant 0 : index
      %63 = vector.load %arg22[%c0_50, %c0_51] : memref<8x128xf32, #tpu.memory_space<vmem>>, vector<8x128xf32>
      tpu.vector_store %arg22[%c0_50, %c0_51], %62 {strides = array<i32>} : memref<8x128xf32, #tpu.memory_space<vmem>>, vector<8x128xf32>,
    } else {
    }
    %c0 = arith.constant 0 : index
    %c0_1 = arith.constant 0 : index
    %3 = vector.load %arg3[%c0, %c0_1] : memref<8x128xf32, #tpu.memory_space<vmem>>, vector<8x128xf32>
    %c0_2 = arith.constant 0 : index
    %c0_3 = arith.constant 0 : index
    %4 = vector.load %arg6[%c0_2, %c0_3] : memref<128x128xf32, #tpu.memory_space<vmem>>, vector<128x128xf32>
    %cst = arith.constant dense<0.000000e+00> : vector<8x128xf32>
    %5 = tpu.matmul %3, %4, %cst {dimension_numbers = #tpu.dot_dimension_numbers<[1], [0], [0], [1], [0, 0, 1, 1], [], []>} : vector<8x128xf32>, vector<128x128xf32>, vector<8x128xf32> -> vector<8x128xf32>
    %c0_4 = arith.constant 0 : index
    %c0_5 = arith.constant 0 : index
    %6 = vector.load %arg7[%c0_4, %c0_5] : memref<1x128xf32, #tpu.memory_space<vmem>>, vector<1x128xf32>
    %7 = vector.broadcast %6 : vector<1x128xf32> to vector<8x128xf32>
    %8 = arith.addf %5, %7 : vector<8x128xf32>
    %c0_6 = arith.constant 0 : index
    %c0_7 = arith.constant 0 : index
    %9 = vector.load %arg8[%c0_6, %c0_7] : memref<128x128xf32, #tpu.memory_space<vmem>>, vector<128x128xf32>
    %cst_8 = arith.constant dense<0.000000e+00> : vector<8x128xf32>
    %10 = tpu.matmul %3, %9, %cst_8 {dimension_numbers = #tpu.dot_dimension_numbers<[1], [0], [0], [1], [0, 0, 1, 1], [], []>} : vector<8x128xf32>, vector<128x128xf32>, vector<8x128xf32> -> vector<8x128xf32>
    %c0_9 = arith.constant 0 : index
    %c0_10 = arith.constant 0 : index
    %11 = vector.load %arg9[%c0_9, %c0_10] : memref<1x128xf32, #tpu.memory_space<vmem>>, vector<1x128xf32>
    %12 = vector.broadcast %11 : vector<1x128xf32> to vector<8x128xf32>
    %13 = arith.addf %10, %12 : vector<8x128xf32>
    %c0_11 = arith.constant 0 : index
    %c0_12 = arith.constant 0 : index
    %14 = vector.load %arg19[%c0_11, %c0_12] : memref<8x128xf32, #tpu.memory_space<vmem>>, vector<8x128xf32>
    %cst_13 = arith.constant dense<0.000000e+00> : vector<8x8xf32>
    %15 = tpu.matmul %14, %8, %cst_13 {dimension_numbers = #tpu.dot_dimension_numbers<[1], [1], [0], [0], [0, 0, 1, 0], [], []>} : vector<8x128xf32>, vector<8x128xf32>, vector<8x8xf32> -> vector<8x8xf32>
    %16 = tpu.iota {dimensions = array<i32: 1>} : vector<8x8xi32>
    %c8_i32 = arith.constant 8 : i32
    %17 = arith.muli %arg1, %c8_i32 : i32
    %18 = vector.broadcast %17 : i32 to vector<8x8xi32>
    %19 = arith.addi %16, %18 : vector<8x8xi32>
    %c8_i32_14 = arith.constant 8 : i32
    %20 = vector.broadcast %c8_i32_14 : i32 to vector<8x8xi32>
    %21 = arith.cmpi slt, %19, %20 : vector<8x8xi32>
    %cst_15 = arith.constant -1.000000e+30 : f32
    %22 = vector.broadcast %cst_15 : f32 to vector<8x8xf32>
    %23 = arith.select %21, %15, %22 : vector<8x8xi1>, vector<8x8xf32>
    %c0_16 = arith.constant 0 : index
    %c0_17 = arith.constant 0 : index
    %24 = vector.load %arg20[%c0_16, %c0_17] : memref<8x1xf32, #tpu.memory_space<vmem>>, vector<8x1xf32>
    %cst_18 = arith.constant dense<0xFF800000> : vector<8xf32>
    %25 = vector.multi_reduction <maximumf>, %23, %cst_18 [1] : vector<8x8xf32> to vector<8xf32>
    %26 = vector.shape_cast %25 : vector<8xf32> to vector<8x1xf32>
    %27 = arith.maximumf %24, %26 : vector<8x1xf32>
    %28 = arith.subf %24, %27 : vector<8x1xf32>
    %29 = math.exp %28 : vector<8x1xf32>
    %30 = vector.broadcast %27 : vector<8x1xf32> to vector<8x8xf32>
    %31 = arith.subf %23, %30 : vector<8x8xf32>
    %32 = math.exp %31 : vector<8x8xf32>
    %c0_19 = arith.constant 0 : index
    %c0_20 = arith.constant 0 : index
    %33 = vector.load %arg21[%c0_19, %c0_20] : memref<8x1xf32, #tpu.memory_space<vmem>>, vector<8x1xf32>
    %34 = arith.mulf %29, %33 : vector<8x1xf32>
    %cst_21 = arith.constant dense<0.000000e+00> : vector<8xf32>
    %35 = vector.multi_reduction <add>, %32, %cst_21 [1] : vector<8x8xf32> to vector<8xf32>
    %36 = vector.shape_cast %35 : vector<8xf32> to vector<8x1xf32>
    %37 = arith.addf %34, %36 : vector<8x1xf32>
    %c0_22 = arith.constant 0 : index
    %c0_23 = arith.constant 0 : index
    %38 = vector.load %arg21[%c0_22, %c0_23] : memref<8x1xf32, #tpu.memory_space<vmem>>, vector<8x1xf32>
    tpu.vector_store %arg21[%c0_22, %c0_23], %37 {strides = array<i32>} : memref<8x1xf32, #tpu.memory_space<vmem>>, vector<8x1xf32>,
    %c0_24 = arith.constant 0 : index
    %c0_25 = arith.constant 0 : index
    %39 = vector.load %arg22[%c0_24, %c0_25] : memref<8x128xf32, #tpu.memory_space<vmem>>, vector<8x128xf32>
    %40 = vector.broadcast %29 : vector<8x1xf32> to vector<8x128xf32>
    %41 = arith.mulf %40, %39 : vector<8x128xf32>
    %cst_26 = arith.constant dense<0.000000e+00> : vector<8x128xf32>
    %42 = tpu.matmul %32, %13, %cst_26 {dimension_numbers = #tpu.dot_dimension_numbers<[1], [0], [0], [1], [0, 0, 1, 1], [], []>} : vector<8x8xf32>, vector<8x128xf32>, vector<8x128xf32> -> vector<8x128xf32>
    %43 = arith.addf %41, %42 : vector<8x128xf32>
    %c0_27 = arith.constant 0 : index
    %c0_28 = arith.constant 0 : index
    %44 = vector.load %arg22[%c0_27, %c0_28] : memref<8x128xf32, #tpu.memory_space<vmem>>, vector<8x128xf32>
    tpu.vector_store %arg22[%c0_27, %c0_28], %43 {strides = array<i32>} : memref<8x128xf32, #tpu.memory_space<vmem>>, vector<8x128xf32>,
    %c0_29 = arith.constant 0 : index
    %c0_30 = arith.constant 0 : index
    %45 = vector.load %arg20[%c0_29, %c0_30] : memref<8x1xf32, #tpu.memory_space<vmem>>, vector<8x1xf32>
    tpu.vector_store %arg20[%c0_29, %c0_30], %27 {strides = array<i32>} : memref<8x1xf32, #tpu.memory_space<vmem>>, vector<8x1xf32>,
    %c0_i32_31 = arith.constant 0 : i32
    %46 = arith.cmpi eq, %arg1, %c0_i32_31 : i32
    %47 = arith.extui %46 : i1 to i32
    %c0_i32_32 = arith.constant 0 : i32
    %48 = arith.cmpi ne, %47, %c0_i32_32 : i32
    scf.if %48 {
      %c0_33 = arith.constant 0 : index
      %c0_34 = arith.constant 0 : index
      %49 = vector.load %arg2[%c0_33, %c0_34] : memref<8x128xf32, #tpu.memory_space<vmem>>, vector<8x128xf32>
      %c0_35 = arith.constant 0 : index
      %c0_36 = arith.constant 0 : index
      %50 = vector.load %arg22[%c0_35, %c0_36] : memref<8x128xf32, #tpu.memory_space<vmem>>, vector<8x128xf32>
      %c0_37 = arith.constant 0 : index
      %c0_38 = arith.constant 0 : index
      %51 = vector.load %arg21[%c0_37, %c0_38] : memref<8x1xf32, #tpu.memory_space<vmem>>, vector<8x1xf32>
      %52 = tpu.reciprocal %51 {approx = true} : vector<8x1xf32> -> vector<8x1xf32>
      %53 = vector.broadcast %52 : vector<8x1xf32> to vector<8x128xf32>
      %54 = arith.mulf %50, %53 : vector<8x128xf32>
      %55 = arith.addf %54, %49 : vector<8x128xf32>
      %c0_39 = arith.constant 0 : index
      %c0_40 = arith.constant 0 : index
      %56 = vector.load %arg14[%c0_39, %c0_40] : memref<1x128xf32, #tpu.memory_space<vmem>>, vector<1x128xf32>
      %c0_41 = arith.constant 0 : index
      %c0_42 = arith.constant 0 : index
      %57 = vector.load %arg15[%c0_41, %c0_42] : memref<1x128xf32, #tpu.memory_space<vmem>>, vector<1x128xf32>
      %cst_43 = arith.constant dense<0.000000e+00> : vector<8xf32>
      %58 = vector.multi_reduction <add>, %55, %cst_43 [1] : vector<8x128xf32> to vector<8xf32>
      %59 = vector.shape_cast %58 : vector<8xf32> to vector<8x1xf32>
      %cst_44 = arith.constant 3.125000e-02 : f32
      %60 = vector.broadcast %cst_44 : f32 to vector<8x1xf32>
      %61 = arith.mulf %59, %60 : vector<8x1xf32>
      %62 = tpu.iota {dimensions = array<i32: 1>} : vector<8x128xi32>
      %c32_i32 = arith.constant 32 : i32
      %63 = vector.broadcast %c32_i32 : i32 to vector<8x128xi32>
      %64 = arith.cmpi slt, %62, %63 : vector<8x128xi32>
      %65 = vector.broadcast %61 : vector<8x1xf32> to vector<8x128xf32>
      %66 = arith.subf %55, %65 : vector<8x128xf32>
      %cst_45 = arith.constant 0.000000e+00 : f32
      %67 = vector.broadcast %cst_45 : f32 to vector<8x128xf32>
      %68 = arith.select %64, %66, %67 : vector<8x128xi1>, vector<8x128xf32>
      %69 = arith.mulf %68, %68 : vector<8x128xf32>
      %cst_46 = arith.constant dense<0.000000e+00> : vector<8xf32>
      %70 = vector.multi_reduction <add>, %69, %cst_46 [1] : vector<8x128xf32> to vector<8xf32>
      %71 = vector.shape_cast %70 : vector<8xf32> to vector<8x1xf32>
      %cst_47 = arith.constant 3.125000e-02 : f32
      %72 = vector.broadcast %cst_47 : f32 to vector<8x1xf32>
      %73 = arith.mulf %71, %72 : vector<8x1xf32>
      %cst_48 = arith.constant 9.99999974E-6 : f32
      %74 = vector.broadcast %cst_48 : f32 to vector<8x1xf32>
      %75 = arith.addf %73, %74 : vector<8x1xf32>
      %76 = math.rsqrt %75 : vector<8x1xf32>
      %77 = vector.broadcast %61 : vector<8x1xf32> to vector<8x128xf32>
      %78 = arith.subf %55, %77 : vector<8x128xf32>
      %79 = vector.broadcast %76 : vector<8x1xf32> to vector<8x128xf32>
      %80 = arith.mulf %78, %79 : vector<8x128xf32>
      %81 = vector.broadcast %56 : vector<1x128xf32> to vector<8x128xf32>
      %82 = arith.mulf %80, %81 : vector<8x128xf32>
      %83 = vector.broadcast %57 : vector<1x128xf32> to vector<8x128xf32>
      %84 = arith.addf %82, %83 : vector<8x128xf32>
      %c0_49 = arith.constant 0 : index
      %c0_50 = arith.constant 0 : index
      %85 = vector.load %arg10[%c0_49, %c0_50] : memref<128x128xf32, #tpu.memory_space<vmem>>, vector<128x128xf32>
      %cst_51 = arith.constant dense<0.000000e+00> : vector<8x128xf32>
      %86 = tpu.matmul %84, %85, %cst_51 {dimension_numbers = #tpu.dot_dimension_numbers<[1], [0], [0], [1], [0, 0, 1, 1], [], []>} : vector<8x128xf32>, vector<128x128xf32>, vector<8x128xf32> -> vector<8x128xf32>
      %c0_52 = arith.constant 0 : index
      %c0_53 = arith.constant 0 : index
      %87 = vector.load %arg11[%c0_52, %c0_53] : memref<1x128xf32, #tpu.memory_space<vmem>>, vector<1x128xf32>
      %88 = vector.broadcast %87 : vector<1x128xf32> to vector<8x128xf32>
      %89 = arith.addf %86, %88 : vector<8x128xf32>
      %cst_54 = arith.constant 0.000000e+00 : f32
      %90 = vector.broadcast %cst_54 : f32 to vector<8x128xf32>
      %91 = arith.maximumf %89, %90 : vector<8x128xf32>
      %c0_55 = arith.constant 0 : index
      %c0_56 = arith.constant 0 : index
      %92 = vector.load %arg12[%c0_55, %c0_56] : memref<128x128xf32, #tpu.memory_space<vmem>>, vector<128x128xf32>
      %cst_57 = arith.constant dense<0.000000e+00> : vector<8x128xf32>
      %93 = tpu.matmul %91, %92, %cst_57 {dimension_numbers = #tpu.dot_dimension_numbers<[1], [0], [0], [1], [0, 0, 1, 1], [], []>} : vector<8x128xf32>, vector<128x128xf32>, vector<8x128xf32> -> vector<8x128xf32>
      %c0_58 = arith.constant 0 : index
      %c0_59 = arith.constant 0 : index
      %94 = vector.load %arg13[%c0_58, %c0_59] : memref<1x128xf32, #tpu.memory_space<vmem>>, vector<1x128xf32>
      %95 = vector.broadcast %94 : vector<1x128xf32> to vector<8x128xf32>
      %96 = arith.addf %93, %95 : vector<8x128xf32>
      %97 = arith.addf %96, %84 : vector<8x128xf32>
      %c0_60 = arith.constant 0 : index
      %c0_61 = arith.constant 0 : index
      %98 = vector.load %arg16[%c0_60, %c0_61] : memref<1x128xf32, #tpu.memory_space<vmem>>, vector<1x128xf32>
      %c0_62 = arith.constant 0 : index
      %c0_63 = arith.constant 0 : index
      %99 = vector.load %arg17[%c0_62, %c0_63] : memref<1x128xf32, #tpu.memory_space<vmem>>, vector<1x128xf32>
      %cst_64 = arith.constant dense<0.000000e+00> : vector<8xf32>
      %100 = vector.multi_reduction <add>, %97, %cst_64 [1] : vector<8x128xf32> to vector<8xf32>
      %101 = vector.shape_cast %100 : vector<8xf32> to vector<8x1xf32>
      %cst_65 = arith.constant 3.125000e-02 : f32
      %102 = vector.broadcast %cst_65 : f32 to vector<8x1xf32>
      %103 = arith.mulf %101, %102 : vector<8x1xf32>
      %104 = tpu.iota {dimensions = array<i32: 1>} : vector<8x128xi32>
      %c32_i32_66 = arith.constant 32 : i32
      %105 = vector.broadcast %c32_i32_66 : i32 to vector<8x128xi32>
      %106 = arith.cmpi slt, %104, %105 : vector<8x128xi32>
      %107 = vector.broadcast %103 : vector<8x1xf32> to vector<8x128xf32>
      %108 = arith.subf %97, %107 : vector<8x128xf32>
      %cst_67 = arith.constant 0.000000e+00 : f32
      %109 = vector.broadcast %cst_67 : f32 to vector<8x128xf32>
      %110 = arith.select %106, %108, %109 : vector<8x128xi1>, vector<8x128xf32>
      %111 = arith.mulf %110, %110 : vector<8x128xf32>
      %cst_68 = arith.constant dense<0.000000e+00> : vector<8xf32>
      %112 = vector.multi_reduction <add>, %111, %cst_68 [1] : vector<8x128xf32> to vector<8xf32>
      %113 = vector.shape_cast %112 : vector<8xf32> to vector<8x1xf32>
      %cst_69 = arith.constant 3.125000e-02 : f32
      %114 = vector.broadcast %cst_69 : f32 to vector<8x1xf32>
      %115 = arith.mulf %113, %114 : vector<8x1xf32>
      %cst_70 = arith.constant 9.99999974E-6 : f32
      %116 = vector.broadcast %cst_70 : f32 to vector<8x1xf32>
      %117 = arith.addf %115, %116 : vector<8x1xf32>
      %118 = math.rsqrt %117 : vector<8x1xf32>
      %119 = vector.broadcast %103 : vector<8x1xf32> to vector<8x128xf32>
      %120 = arith.subf %97, %119 : vector<8x128xf32>
      %121 = vector.broadcast %118 : vector<8x1xf32> to vector<8x128xf32>
      %122 = arith.mulf %120, %121 : vector<8x128xf32>
      %123 = vector.broadcast %98 : vector<1x128xf32> to vector<8x128xf32>
      %124 = arith.mulf %122, %123 : vector<8x128xf32>
      %125 = vector.broadcast %99 : vector<1x128xf32> to vector<8x128xf32>
      %126 = arith.addf %124, %125 : vector<8x128xf32>
      %c0_71 = arith.constant 0 : index
      %c0_72 = arith.constant 0 : index
      %127 = vector.load %arg18[%c0_71, %c0_72] : memref<8x128xf32, #tpu.memory_space<vmem>>, vector<8x128xf32>
      tpu.vector_store %arg18[%c0_71, %c0_72], %126 {strides = array<i32>} : memref<8x128xf32, #tpu.memory_space<vmem>>, vector<8x128xf32>,
    } else {
    }
    return
  }
  func.func @transform_0(%arg0: i32, %arg1: i32) -> (i32, i32) {
    %c0_i32 = arith.constant 0 : i32
    %c0_i32_0 = arith.constant 0 : i32
    return %arg0, %c0_i32 : i32, i32
  }
  func.func @transform_1(%arg0: i32, %arg1: i32) -> (i32, i32) {
    %c0_i32 = arith.constant 0 : i32
    %c0_i32_0 = arith.constant 0 : i32
    return %arg1, %c0_i32 : i32, i32
  }
  func.func @transform_2(%arg0: i32, %arg1: i32) -> (i32, i32) {
    %c0_i32 = arith.constant 0 : i32
    %c0_i32_0 = arith.constant 0 : i32
    %c0_i32_1 = arith.constant 0 : i32
    return %c0_i32, %c0_i32_0 : i32, i32
  }
  func.func @transform_3(%arg0: i32, %arg1: i32) -> (i32, i32) {
    %c0_i32 = arith.constant 0 : i32
    %c0_i32_0 = arith.constant 0 : i32
    %c0_i32_1 = arith.constant 0 : i32
    return %c0_i32, %c0_i32_0 : i32, i32
  }
  func.func @transform_4(%arg0: i32, %arg1: i32) -> (i32, i32) {
    %c0_i32 = arith.constant 0 : i32
    %c0_i32_0 = arith.constant 0 : i32
    %c0_i32_1 = arith.constant 0 : i32
    return %c0_i32, %c0_i32_0 : i32, i32
  }
  func.func @transform_5(%arg0: i32, %arg1: i32) -> (i32, i32) {
    %c0_i32 = arith.constant 0 : i32
    %c0_i32_0 = arith.constant 0 : i32
    %c0_i32_1 = arith.constant 0 : i32
    return %c0_i32, %c0_i32_0 : i32, i32
  }
  func.func @transform_6(%arg0: i32, %arg1: i32) -> (i32, i32) {
    %c0_i32 = arith.constant 0 : i32
    %c0_i32_0 = arith.constant 0 : i32
    %c0_i32_1 = arith.constant 0 : i32
    return %c0_i32, %c0_i32_0 : i32, i32
  }
  func.func @transform_7(%arg0: i32, %arg1: i32) -> (i32, i32) {
    %c0_i32 = arith.constant 0 : i32
    %c0_i32_0 = arith.constant 0 : i32
    %c0_i32_1 = arith.constant 0 : i32
    return %c0_i32, %c0_i32_0 : i32, i32
  }
  func.func @transform_8(%arg0: i32, %arg1: i32) -> (i32, i32) {
    %c0_i32 = arith.constant 0 : i32
    %c0_i32_0 = arith.constant 0 : i32
    %c0_i32_1 = arith.constant 0 : i32
    return %c0_i32, %c0_i32_0 : i32, i32
  }
  func.func @transform_9(%arg0: i32, %arg1: i32) -> (i32, i32) {
    %c0_i32 = arith.constant 0 : i32
    %c0_i32_0 = arith.constant 0 : i32
    %c0_i32_1 = arith.constant 0 : i32
    return %c0_i32, %c0_i32_0 : i32, i32
  }
  func.func @transform_10(%arg0: i32, %arg1: i32) -> (i32, i32) {
    %c0_i32 = arith.constant 0 : i32
    %c0_i32_0 = arith.constant 0 : i32
    %c0_i32_1 = arith.constant 0 : i32
    return %c0_i32, %c0_i32_0 : i32, i32
  }
  func.func @transform_11(%arg0: i32, %arg1: i32) -> (i32, i32) {
    %c0_i32 = arith.constant 0 : i32
    %c0_i32_0 = arith.constant 0 : i32
    %c0_i32_1 = arith.constant 0 : i32
    return %c0_i32, %c0_i32_0 : i32, i32
  }
  func.func @transform_12(%arg0: i32, %arg1: i32) -> (i32, i32) {
    %c0_i32 = arith.constant 0 : i32
    %c0_i32_0 = arith.constant 0 : i32
    %c0_i32_1 = arith.constant 0 : i32
    return %c0_i32, %c0_i32_0 : i32, i32
  }
  func.func @transform_13(%arg0: i32, %arg1: i32) -> (i32, i32) {
    %c0_i32 = arith.constant 0 : i32
    %c0_i32_0 = arith.constant 0 : i32
    %c0_i32_1 = arith.constant 0 : i32
    return %c0_i32, %c0_i32_0 : i32, i32
  }
  func.func @transform_14(%arg0: i32, %arg1: i32) -> (i32, i32) {
    %c0_i32 = arith.constant 0 : i32
    %c0_i32_0 = arith.constant 0 : i32
    %c0_i32_1 = arith.constant 0 : i32
    return %c0_i32, %c0_i32_0 : i32, i32
  }
  func.func @transform_15(%arg0: i32, %arg1: i32) -> (i32, i32) {
    %c0_i32 = arith.constant 0 : i32
    %c0_i32_0 = arith.constant 0 : i32
    %c0_i32_1 = arith.constant 0 : i32
    return %c0_i32, %c0_i32_0 : i32, i32
  }
  func.func @transform_16(%arg0: i32, %arg1: i32) -> (i32, i32) {
    %c0_i32 = arith.constant 0 : i32
    %c0_i32_0 = arith.constant 0 : i32
    return %arg0, %c0_i32 : i32, i32
  }
}

</mosaic_0001>

<bundles_post_ra>
// kernel: tpu_custom_call.1
= control target key start
LH: loop header
LB: loop body
LE: loop exit
PB: predicated region body
PF: predicated region fallthrough
CT: control target
= control target key end

     0   :  { %s2255_s0 = inlined_call_operand.hbm [shape: f32[8,128], index: 0, kind: input, shape index: {}]   ;;  %s2256_s1 = inlined_call_operand.hbm [shape: f32[8,128], index: 1, kind: input, shape index: {}]   ;;  %s2257_s2 = inlined_call_operand.hbm [shape: f32[128,128], index: 2, kind: input, shape index: {}]   ;;  %s2258_s3 = inlined_call_operand.hbm [shape: f32[1,128], index: 3, kind: input, shape index: {}]   ;;  %s2259_s4 = inlined_call_operand.hbm [shape: f32[128,128], index: 4, kind: input, shape index: {}]   ;;  %s2260_s5 = inlined_call_operand.hbm [shape: f32[1,128], index: 5, kind: input, shape index: {}]   ;;  %s2261_s6 = inlined_call_operand.hbm [shape: f32[128,128], index: 6, kind: input, shape index: {}]   ;;  %s2262_s7 = inlined_call_operand.hbm [shape: f32[1,128], index: 7, kind: input, shape index: {}]   ;;  %s2263_s8 = inlined_call_operand.hbm [shape: f32[128,128], index: 8, kind: input, shape index: {}]   ;;  %s2264_s9 = inlined_call_operand.hbm [shape: f32[1,128], index: 9, kind: input, shape index: {}]   ;;  %s2265_s10 = inlined_call_operand.hbm [shape: f32[128,128], index: 10, kind: input, shape index: {}]   ;;  %s2266_s11 = inlined_call_operand.hbm [shape: f32[1,128], index: 11, kind: input, shape index: {}]   ;;  %s2267_s12 = inlined_call_operand.hbm [shape: f32[1,128], index: 12, kind: input, shape index: {}]   ;;  %s2268_s13 = inlined_call_operand.hbm [shape: f32[1,128], index: 13, kind: input, shape index: {}]   ;;  %s2269_s14 = inlined_call_operand.hbm [shape: f32[1,128], index: 14, kind: input, shape index: {}]   ;;  %s2270_s15 = inlined_call_operand.hbm [shape: f32[1,128], index: 15, kind: input, shape index: {}]   ;;  %s2271_s16 = inlined_call_operand.hbm [shape: f32[8,128], index: 16, kind: output, shape index: {}]  }
   0x1   :  { %2273 = sst [smem:[#allocation43_spill]] %s2255_s0 }
   0x2   :  { %21 = vsyncpa [#allocation7], 0 }
   0x3   :  { %22 = vsyncpa [#allocation10], 0 }
   0x4   :  { %23 = vsyncpa [#allocation13], 0 }
   0x5   :  { %24 = vsyncpa [#allocation16], 0 }
   0x6   :  { %25 = vsyncpa [#allocation19], 0 }
   0x7   :  { %26 = vsyncpa [#allocation22], 0 }
   0x8   :  { %27 = vsyncpa [#allocation25], 0 }
   0x9   :  { %28 = vsyncpa [#allocation28], 0 }
   0xa   :  { %29 = vsyncpa [#allocation31], 0 }
   0xb   :  { %30 = vsyncpa [#allocation8], 0  ;;  %s1843_s21 = smov [#allocation9]   ;;  %s1844_s23 = smov [#allocation12]  }
   0xc   :  { %s47_s22 = sshll.u32 %s1843_s21, 4  ;;  %s69_s24 = sshll.u32 %s1844_s23, 4  ;;  %s48_s22 = int_to_ptr.vmem [resolvable:$true] %s47_s22  ;;  %s70_s24 = int_to_ptr.vmem [resolvable:$true] %s69_s24 }
   0xd   :  { %s1449_s27 = scalar_lea.hbm %s2256_s1, 128 }
   0xe   :  { %p1450_p0 = scmp.ne.s32.totalorder %s2256_s1, %s1449_s27  ;;  %p1453_p1 = scmp.lt.u32.totalorder %s1449_s27, %s2256_s1 }
  0x10   :  { %p1455_p2 = pnand %p1453_p1, %p1450_p0 }
  0x12   :  { %1458 = shalt.err (!%p1455_p2)
}
  0x13   :  { %s1459_s17 = scalar_lea.vmem %s48_s22, 128  ;;  %p1464_p4 = scmp.lt.s32.totalorder %s48_s22, %s48_s22 }
  0x14   :  { %p1460_p3 = scmp.ne.s32.totalorder %s48_s22, %s1459_s17  ;;  %p1465_p5 = scmp.lt.s32.totalorder %s1459_s17, %s1459_s17 }
  0x16   :  { %p1466_p6 = por %p1465_p5, %p1464_p4 }
  0x18   :  { %p1467_p7 = pnand %p1466_p6, %p1460_p3 }
  0x1a   :  { %1470 = shalt.err (!%p1467_p7)
}
  0x1b   :  { %50 = dma.hbm_to_vmem [thread:$0]  %s2256_s1, 128, %s48_s22, [#allocation10]  }
  0x1c   :  { %s1471_s23 = scalar_lea.hbm %s2258_s3, 16 }
  0x1d   :  { %p1472_p8 = scmp.ne.s32.totalorder %s2258_s3, %s1471_s23  ;;  %p1475_p9 = scmp.lt.u32.totalorder %s1471_s23, %s2258_s3 }
  0x1f   :  { %p1477_p10 = pnand %p1475_p9, %p1472_p8 }
  0x21   :  { %1480 = shalt.err (!%p1477_p10)
}
  0x22   :  { %s1481_s29 = scalar_lea.vmem %s70_s24, 16  ;;  %s1485_s30 = scalar_lea.vmem %s70_s24, 32 }
  0x23   :  { %p1482_p11 = scmp.ne.s32.totalorder %s70_s24, %s1481_s29  ;;  %p1486_p12 = scmp.lt.s32.totalorder %s70_s24, %s70_s24 }
  0x24   :  { %p1487_p13 = scmp.lt.s32.totalorder %s1485_s30, %s1481_s29 }
  0x26   :  { %p1488_p0 = por %p1487_p13, %p1486_p12 }
  0x28   :  { %p1489_p1 = pnand %p1488_p0, %p1482_p11 }
  0x2a   :  { %1492 = shalt.err (!%p1489_p1)
}
  0x2b   :  { %72 = dma.hbm_to_vmem [thread:$0]  %s2258_s3, 16, %s70_s24, [#allocation13]  }
  0x2c   :  { %s1845_s0 = smov [#allocation15]   ;;  %s1846_s18 = smov [#allocation18]  }
  0x2d   :  { %s91_s17 = sshll.u32 %s1845_s0, 4  ;;  %s113_s19 = sshll.u32 %s1846_s18, 4  ;;  %s92_s17 = int_to_ptr.vmem [resolvable:$true] %s91_s17  ;;  %s114_s19 = int_to_ptr.vmem [resolvable:$true] %s113_s19 }
  0x2e   :  { %s1493_s23 = scalar_lea.hbm %s2260_s5, 16 }
  0x2f   :  { %p1494_p2 = scmp.ne.s32.totalorder %s2260_s5, %s1493_s23  ;;  %p1497_p3 = scmp.lt.u32.totalorder %s1493_s23, %s2260_s5 }
  0x31   :  { %p1499_p4 = pnand %p1497_p3, %p1494_p2 }
  0x33   :  { %1502 = shalt.err (!%p1499_p4)
}
  0x34   :  { %s1503_s3 = scalar_lea.vmem %s92_s17, 16  ;;  %s1507_s24 = scalar_lea.vmem %s92_s17, 32 }
  0x35   :  { %p1504_p5 = scmp.ne.s32.totalorder %s92_s17, %s1503_s3  ;;  %p1508_p6 = scmp.lt.s32.totalorder %s92_s17, %s92_s17 }
  0x36   :  { %p1509_p7 = scmp.lt.s32.totalorder %s1507_s24, %s1503_s3 }
  0x38   :  { %p1510_p8 = por %p1509_p7, %p1508_p6 }
  0x3a   :  { %p1511_p9 = pnand %p1510_p8, %p1504_p5 }
  0x3c   :  { %1514 = shalt.err (!%p1511_p9)
}
  0x3d   :  { %94 = dma.hbm_to_vmem [thread:$0]  %s2260_s5, 16, %s92_s17, [#allocation16]  }
  0x3e   :  { %s1515_s0 = scalar_lea.hbm %s2262_s7, 16 }
  0x3f   :  { %p1516_p10 = scmp.ne.s32.totalorder %s2262_s7, %s1515_s0  ;;  %p1519_p11 = scmp.lt.u32.totalorder %s1515_s0, %s2262_s7 }
  0x41   :  { %p1521_p12 = pnand %p1519_p11, %p1516_p10 }
  0x43   :  { %1524 = shalt.err (!%p1521_p12)
}
  0x44   :  { %s1525_s25 = scalar_lea.vmem %s114_s19, 16  ;;  %s1529_s26 = scalar_lea.vmem %s114_s19, 32 }
  0x45   :  { %p1526_p13 = scmp.ne.s32.totalorder %s114_s19, %s1525_s25  ;;  %p1530_p0 = scmp.lt.s32.totalorder %s114_s19, %s114_s19 }
  0x46   :  { %p1531_p1 = scmp.lt.s32.totalorder %s1529_s26, %s1525_s25 }
  0x48   :  { %p1532_p2 = por %p1531_p1, %p1530_p0 }
  0x4a   :  { %p1533_p3 = pnand %p1532_p2, %p1526_p13 }
  0x4c   :  { %1536 = shalt.err (!%p1533_p3)
}
  0x4d   :  { %116 = dma.hbm_to_vmem [thread:$0]  %s2262_s7, 16, %s114_s19, [#allocation19]  }
  0x4e   :  { %s1847_s27 = smov [#allocation21]   ;;  %s1848_s3 = smov [#allocation24]  }
  0x4f   :  { %s135_s28 = sshll.u32 %s1847_s27, 4  ;;  %s157_s24 = sshll.u32 %s1848_s3, 4  ;;  %s136_s28 = int_to_ptr.vmem [resolvable:$true] %s135_s28  ;;  %s158_s24 = int_to_ptr.vmem [resolvable:$true] %s157_s24 }
  0x50   :  { %s1537_s1 = scalar_lea.hbm %s2264_s9, 16 }
  0x51   :  { %p1538_p4 = scmp.ne.s32.totalorder %s2264_s9, %s1537_s1  ;;  %p1541_p5 = scmp.lt.u32.totalorder %s1537_s1, %s2264_s9 }
  0x53   :  { %p1543_p6 = pnand %p1541_p5, %p1538_p4 }
  0x55   :  { %1546 = shalt.err (!%p1543_p6)
}
  0x56   :  { %s1547_s7 = scalar_lea.vmem %s136_s28, 16  ;;  %s1551_s19 = scalar_lea.vmem %s136_s28, 32 }
  0x57   :  { %p1548_p7 = scmp.ne.s32.totalorder %s136_s28, %s1547_s7  ;;  %p1552_p8 = scmp.lt.s32.totalorder %s136_s28, %s136_s28 }
  0x58   :  { %p1553_p9 = scmp.lt.s32.totalorder %s1551_s19, %s1547_s7 }
  0x5a   :  { %p1554_p10 = por %p1553_p9, %p1552_p8 }
  0x5c   :  { %p1555_p11 = pnand %p1554_p10, %p1548_p7 }
  0x5e   :  { %1558 = shalt.err (!%p1555_p11)
}
  0x5f   :  { %138 = dma.hbm_to_vmem [thread:$0]  %s2264_s9, 16, %s136_s28, [#allocation22]  }
  0x60   :  { %s1559_s5 = scalar_lea.hbm %s2266_s11, 16 }
  0x61   :  { %p1560_p12 = scmp.ne.s32.totalorder %s2266_s11, %s1559_s5  ;;  %p1563_p13 = scmp.lt.u32.totalorder %s1559_s5, %s2266_s11 }
  0x63   :  { %p1565_p0 = pnand %p1563_p13, %p1560_p12 }
  0x65   :  { %1568 = shalt.err (!%p1565_p0)
}
  0x66   :  { %s1569_s30 = scalar_lea.vmem %s158_s24, 16  ;;  %s1573_s1 = scalar_lea.vmem %s158_s24, 32 }
  0x67   :  { %p1570_p1 = scmp.ne.s32.totalorder %s158_s24, %s1569_s30  ;;  %p1574_p2 = scmp.lt.s32.totalorder %s158_s24, %s158_s24 }
  0x68   :  { %p1575_p3 = scmp.lt.s32.totalorder %s1573_s1, %s1569_s30 }
  0x6a   :  { %p1576_p4 = por %p1575_p3, %p1574_p2 }
  0x6c   :  { %p1577_p5 = pnand %p1576_p4, %p1570_p1 }
  0x6e   :  { %1580 = shalt.err (!%p1577_p5)
}
  0x6f   :  { %160 = dma.hbm_to_vmem [thread:$0]  %s2266_s11, 16, %s158_s24, [#allocation25]  }
  0x70   :  { %s1849_s22 = smov [#allocation27]   ;;  %s1850_s18 = smov [#allocation6]  }
  0x71   :  { %s177_s0 = sshll.u32 %s1849_s22, 4  ;;  %s37_s20 = sshll.u32 %s1850_s18, 4  ;;  %s178_s0 = int_to_ptr.vmem [resolvable:$true] %s177_s0  ;;  %s38_s20 = int_to_ptr.vmem [resolvable:$true] %s37_s20 }
  0x72   :  { %s1581_s21 = scalar_lea.hbm %s2268_s13, 16 }
  0x73   :  { %p1582_p6 = scmp.ne.s32.totalorder %s2268_s13, %s1581_s21  ;;  %p1585_p7 = scmp.lt.u32.totalorder %s1581_s21, %s2268_s13 }
  0x75   :  { %p1587_p8 = pnand %p1585_p7, %p1582_p6 }
  0x77   :  { %1590 = shalt.err (!%p1587_p8)
}
  0x78   :  { %s1591_s11 = scalar_lea.vmem %s178_s0, 16  ;;  %s1595_s24 = scalar_lea.vmem %s178_s0, 32 }
  0x79   :  { %p1592_p9 = scmp.ne.s32.totalorder %s178_s0, %s1591_s11  ;;  %p1596_p10 = scmp.lt.s32.totalorder %s178_s0, %s178_s0 }
  0x7a   :  { %p1597_p11 = scmp.lt.s32.totalorder %s1595_s24, %s1591_s11 }
  0x7c   :  { %p1598_p12 = por %p1597_p11, %p1596_p10 }
  0x7e   :  { %p1599_p13 = pnand %p1598_p12, %p1592_p9 }
  0x80   :  { %1602 = shalt.err (!%p1599_p13)
}
  0x81   :  { %180 = dma.hbm_to_vmem [thread:$0]  %s2268_s13, 16, %s178_s0, [#allocation28]  }
  0x82   :  { %s2274_s30 = sld [smem:[#allocation43_spill]] }
  0x88   :  { %s1603_s1 = scalar_lea.hbm %s2274_s30, 128 }
  0x89   :  { %p1604_p0 = scmp.ne.s32.totalorder %s2274_s30, %s1603_s1  ;;  %p1607_p1 = scmp.lt.u32.totalorder %s1603_s1, %s2274_s30 }
  0x8b   :  { %p1609_p2 = pnand %p1607_p1, %p1604_p0 }
  0x8d   :  { %1612 = shalt.err (!%p1609_p2)
}
  0x8e   :  { %s1613_s7 = scalar_lea.vmem %s38_s20, 128  ;;  %p1618_p4 = scmp.lt.s32.totalorder %s38_s20, %s38_s20 }
  0x8f   :  { %p1614_p3 = scmp.ne.s32.totalorder %s38_s20, %s1613_s7  ;;  %p1619_p5 = scmp.lt.s32.totalorder %s1613_s7, %s1613_s7 }
  0x91   :  { %p1620_p6 = por %p1619_p5, %p1618_p4 }
  0x93   :  { %p1621_p7 = pnand %p1620_p6, %p1614_p3 }
  0x95   :  { %1624 = shalt.err (!%p1621_p7)
}
  0x96   :  { %40 = dma.hbm_to_vmem [thread:$0]  %s2274_s30, 128, %s38_s20, [#allocation7]  }
  0x97   :  { %s1851_s19 = smov [#allocation11]   ;;  %s1625_s26 = scalar_lea.hbm %s2257_s2, 2048 }
  0x98   :  { %s56_s21 = sshll.u32 %s1851_s19, 4  ;;  %p1626_p8 = scmp.ne.s32.totalorder %s2257_s2, %s1625_s26  ;;  %s57_s21 = int_to_ptr.vmem [resolvable:$true] %s56_s21 }
  0x99   :  { %p1629_p9 = scmp.lt.u32.totalorder %s1625_s26, %s2257_s2 }
  0x9b   :  { %p1631_p10 = pnand %p1629_p9, %p1626_p8 }
  0x9d   :  { %1634 = shalt.err (!%p1631_p10)
}
  0x9e   :  { %s1635_s27 = scalar_lea.vmem %s57_s21, 2048  ;;  %p1640_p12 = scmp.lt.s32.totalorder %s57_s21, %s57_s21 }
  0x9f   :  { %p1636_p11 = scmp.ne.s32.totalorder %s57_s21, %s1635_s27  ;;  %p1641_p13 = scmp.lt.s32.totalorder %s1635_s27, %s1635_s27 }
  0xa1   :  { %p1642_p0 = por %p1641_p13, %p1640_p12 }
  0xa3   :  { %p1643_p1 = pnand %p1642_p0, %p1636_p11 }
  0xa5   :  { %1646 = shalt.err (!%p1643_p1)
}
  0xa6   :  { %s1852_s20 = smov 128   ;;  %s1853_s3 = smov 8  }
  0xa7   :  { %62 = dma.hbm_to_vmem [thread:$0]  %s2257_s2, 2048, %s57_s21, [#allocation10], %s1852_s20, %s1852_s20, %s1853_s3  }
  0xa8   :  { %s1854_s1 = smov [#allocation14]   ;;  %s1855_s28 = smov [#allocation17]  }
  0xa9   :  { %s78_s9 = sshll.u32 %s1854_s1, 4  ;;  %s100_s22 = sshll.u32 %s1855_s28, 4  ;;  %s79_s9 = int_to_ptr.vmem [resolvable:$true] %s78_s9  ;;  %s101_s22 = int_to_ptr.vmem [resolvable:$true] %s100_s22 }
  0xaa   :  { %s1647_s13 = scalar_lea.hbm %s2259_s4, 2048 }
  0xab   :  { %p1648_p2 = scmp.ne.s32.totalorder %s2259_s4, %s1647_s13  ;;  %p1651_p3 = scmp.lt.u32.totalorder %s1647_s13, %s2259_s4 }
  0xad   :  { %p1653_p4 = pnand %p1651_p3, %p1648_p2 }
  0xaf   :  { %1656 = shalt.err (!%p1653_p4)
}
  0xb0   :  { %s1657_s2 = scalar_lea.vmem %s79_s9, 2048  ;;  %p1662_p6 = scmp.lt.s32.totalorder %s79_s9, %s79_s9 }
  0xb1   :  { %p1658_p5 = scmp.ne.s32.totalorder %s79_s9, %s1657_s2  ;;  %p1663_p7 = scmp.lt.s32.totalorder %s1657_s2, %s1657_s2 }
  0xb3   :  { %p1664_p8 = por %p1663_p7, %p1662_p6 }
  0xb5   :  { %p1665_p9 = pnand %p1664_p8, %p1658_p5 }
  0xb7   :  { %1668 = shalt.err (!%p1665_p9)
}
  0xb8   :  { %84 = dma.hbm_to_vmem [thread:$0]  %s2259_s4, 2048, %s79_s9, [#allocation13], %s1852_s20, %s1852_s20, %s1853_s3  }
  0xb9   :  { %s1669_s24 = scalar_lea.hbm %s2261_s6, 2048 }
  0xba   :  { %p1670_p10 = scmp.ne.s32.totalorder %s2261_s6, %s1669_s24  ;;  %p1673_p11 = scmp.lt.u32.totalorder %s1669_s24, %s2261_s6 }
  0xbc   :  { %p1675_p12 = pnand %p1673_p11, %p1670_p10 }
  0xbe   :  { %1678 = shalt.err (!%p1675_p12)
}
  0xbf   :  { %s1679_s1 = scalar_lea.vmem %s101_s22, 2048  ;;  %p1684_p0 = scmp.lt.s32.totalorder %s101_s22, %s101_s22 }
  0xc0   :  { %p1680_p13 = scmp.ne.s32.totalorder %s101_s22, %s1679_s1  ;;  %p1685_p1 = scmp.lt.s32.totalorder %s1679_s1, %s1679_s1 }
  0xc2   :  { %p1686_p2 = por %p1685_p1, %p1684_p0 }
  0xc4   :  { %p1687_p3 = pnand %p1686_p2, %p1680_p13 }
  0xc6   :  { %1690 = shalt.err (!%p1687_p3)
}
  0xc7   :  { %106 = dma.hbm_to_vmem [thread:$0]  %s2261_s6, 2048, %s101_s22, [#allocation16], %s1852_s20, %s1852_s20, %s1853_s3  }
  0xc8   :  { %s1856_s28 = smov [#allocation20]   ;;  %s1857_s7 = smov [#allocation23]  }
  0xc9   :  { %s122_s18 = sshll.u32 %s1856_s28, 4  ;;  %s144_s13 = sshll.u32 %s1857_s7, 4  ;;  %s123_s18 = int_to_ptr.vmem [resolvable:$true] %s122_s18  ;;  %s145_s13 = int_to_ptr.vmem [resolvable:$true] %s144_s13 }
  0xca   :  { %s1691_s23 = scalar_lea.hbm %s2263_s8, 2048 }
  0xcb   :  { %p1692_p4 = scmp.ne.s32.totalorder %s2263_s8, %s1691_s23  ;;  %p1695_p5 = scmp.lt.u32.totalorder %s1691_s23, %s2263_s8 }
  0xcd   :  { %p1697_p6 = pnand %p1695_p5, %p1692_p4 }
  0xcf   :  { %1700 = shalt.err (!%p1697_p6)
}
  0xd0   :  { %s1701_s6 = scalar_lea.vmem %s123_s18, 2048  ;;  %p1706_p8 = scmp.lt.s32.totalorder %s123_s18, %s123_s18 }
  0xd1   :  { %p1702_p7 = scmp.ne.s32.totalorder %s123_s18, %s1701_s6  ;;  %p1707_p9 = scmp.lt.s32.totalorder %s1701_s6, %s1701_s6 }
  0xd3   :  { %p1708_p10 = por %p1707_p9, %p1706_p8 }
  0xd5   :  { %p1709_p11 = pnand %p1708_p10, %p1702_p7 }
  0xd7   :  { %1712 = shalt.err (!%p1709_p11)
}
  0xd8   :  { %128 = dma.hbm_to_vmem [thread:$0]  %s2263_s8, 2048, %s123_s18, [#allocation19], %s1852_s20, %s1852_s20, %s1853_s3  }
  0xd9   :  { %s1713_s17 = scalar_lea.hbm %s2265_s10, 2048 }
  0xda   :  { %p1714_p12 = scmp.ne.s32.totalorder %s2265_s10, %s1713_s17  ;;  %p1717_p13 = scmp.lt.u32.totalorder %s1713_s17, %s2265_s10 }
  0xdc   :  { %p1719_p0 = pnand %p1717_p13, %p1714_p12 }
  0xde   :  { %1722 = shalt.err (!%p1719_p0)
}
  0xdf   :  { %s1723_s4 = scalar_lea.vmem %s145_s13, 2048  ;;  %p1728_p2 = scmp.lt.s32.totalorder %s145_s13, %s145_s13 }
  0xe0   :  { %p1724_p1 = scmp.ne.s32.totalorder %s145_s13, %s1723_s4  ;;  %p1729_p3 = scmp.lt.s32.totalorder %s1723_s4, %s1723_s4 }
  0xe2   :  { %p1730_p4 = por %p1729_p3, %p1728_p2 }
  0xe4   :  { %p1731_p5 = pnand %p1730_p4, %p1724_p1 }
  0xe6   :  { %1734 = shalt.err (!%p1731_p5)
}
  0xe7   :  { %150 = dma.hbm_to_vmem [thread:$0]  %s2265_s10, 2048, %s145_s13, [#allocation22], %s1852_s20, %s1852_s20, %s1853_s3  }
  0xe8   :  { %s1858_s28 = smov [#allocation26]   ;;  %s1859_s7 = smov [#allocation29]  }
  0xe9   :  { %s167_s18 = sshll.u32 %s1858_s28, 4  ;;  %s187_s0 = sshll.u32 %s1859_s7, 4  ;;  %s168_s18 = int_to_ptr.vmem [resolvable:$true] %s167_s18  ;;  %s188_s0 = int_to_ptr.vmem [resolvable:$true] %s187_s0 }
  0xea   :  { %s1735_s25 = scalar_lea.hbm %s2267_s12, 16 }
  0xeb   :  { %p1736_p6 = scmp.ne.s32.totalorder %s2267_s12, %s1735_s25  ;;  %p1739_p7 = scmp.lt.u32.totalorder %s1735_s25, %s2267_s12 }
  0xed   :  { %p1741_p8 = pnand %p1739_p7, %p1736_p6 }
  0xef   :  { %1744 = shalt.err (!%p1741_p8)
}
  0xf0   :  { %s1745_s10 = scalar_lea.vmem %s168_s18, 16  ;;  %s1749_s20 = scalar_lea.vmem %s168_s18, 32 }
  0xf1   :  { %p1746_p9 = scmp.ne.s32.totalorder %s168_s18, %s1745_s10  ;;  %p1750_p10 = scmp.lt.s32.totalorder %s168_s18, %s168_s18 }
  0xf2   :  { %p1751_p11 = scmp.lt.s32.totalorder %s1749_s20, %s1745_s10 }
  0xf4   :  { %p1752_p12 = por %p1751_p11, %p1750_p10 }
  0xf6   :  { %p1753_p13 = pnand %p1752_p12, %p1746_p9 }
  0xf8   :  { %1756 = shalt.err (!%p1753_p13)
}
  0xf9   :  { %170 = dma.hbm_to_vmem [thread:$0]  %s2267_s12, 16, %s168_s18, [#allocation25]  }
  0xfa   :  { %s1757_s11 = scalar_lea.hbm %s2269_s14, 16 }
  0xfb   :  { %p1758_p0 = scmp.ne.s32.totalorder %s2269_s14, %s1757_s11  ;;  %p1761_p1 = scmp.lt.u32.totalorder %s1757_s11, %s2269_s14 }
  0xfd   :  { %p1763_p2 = pnand %p1761_p1, %p1758_p0 }
  0xff   :  { %1766 = shalt.err (!%p1763_p2)
}
 0x100   :  { %s1767_s30 = scalar_lea.vmem %s188_s0, 16  ;;  %s1771_s1 = scalar_lea.vmem %s188_s0, 32 }
 0x101   :  { %p1768_p3 = scmp.ne.s32.totalorder %s188_s0, %s1767_s30  ;;  %p1772_p4 = scmp.lt.s32.totalorder %s188_s0, %s188_s0 }
 0x102   :  { %p1773_p5 = scmp.lt.s32.totalorder %s1771_s1, %s1767_s30 }
 0x104   :  { %p1774_p6 = por %p1773_p5, %p1772_p4 }
 0x106   :  { %p1775_p7 = pnand %p1774_p6, %p1768_p3 }
 0x108   :  { %1778 = shalt.err (!%p1775_p7)
}
 0x109   :  { %190 = dma.hbm_to_vmem [thread:$0]  %s2269_s14, 16, %s188_s0, [#allocation28]  }
 0x10a   :  { %s1860_s8 = smov [#allocation30]   ;;  %s1779_s7 = scalar_lea.hbm %s2270_s15, 16 }
 0x10b   :  { %s197_s9 = sshll.u32 %s1860_s8, 4  ;;  %p1780_p8 = scmp.ne.s32.totalorder %s2270_s15, %s1779_s7  ;;  %s198_s9 = int_to_ptr.vmem [resolvable:$true] %s197_s9 }
 0x10c   :  { %p1783_p9 = scmp.lt.u32.totalorder %s1779_s7, %s2270_s15 }
 0x10e   :  { %p1785_p10 = pnand %p1783_p9, %p1780_p8 }
 0x110   :  { %1788 = shalt.err (!%p1785_p10)
}
 0x111   :  { %s1789_s21 = scalar_lea.vmem %s198_s9, 16  ;;  %s1793_s14 = scalar_lea.vmem %s198_s9, 32 }
 0x112   :  { %p1790_p11 = scmp.ne.s32.totalorder %s198_s9, %s1789_s21  ;;  %p1794_p12 = scmp.lt.s32.totalorder %s198_s9, %s198_s9 }
 0x113   :  { %p1795_p13 = scmp.lt.s32.totalorder %s1793_s14, %s1789_s21 }
 0x115   :  { %p1796_p0 = por %p1795_p13, %p1794_p12 }
 0x117   :  { %p1797_p1 = pnand %p1796_p0, %p1790_p11 }
 0x119   :  { %1800 = shalt.err (!%p1797_p1)
}
 0x11a   :  { %200 = dma.hbm_to_vmem [thread:$0]  %s2270_s15, 16, %s198_s9, [#allocation31]  }
 0x11b   :  { %1823 = dma.done.wait [#allocation7], 128  }
 0x11c   :  { %1824 = vsyncadd [#allocation7], 4294967168 }
 0x11d   :  { %1825 = dma.done.wait [#allocation10], 2176  }
 0x11e   :  { %1826 = vsyncadd [#allocation10], 4294965120 }
 0x11f   :  { %1827 = dma.done.wait [#allocation13], 2064  }
 0x120   :  { %1828 = vsyncadd [#allocation13], 4294965232 }
 0x121   :  { %1829 = dma.done.wait [#allocation16], 2064  }
 0x122   :  { %1830 = vsyncadd [#allocation16], 4294965232 }
 0x123   :  { %1831 = dma.done.wait [#allocation19], 2064  }
 0x124   :  { %1832 = vsyncadd [#allocation19], 4294965232 }
 0x125   :  { %1833 = dma.done.wait [#allocation22], 2064  }
 0x126   :  { %1834 = vsyncadd [#allocation22], 4294965232 }
 0x127   :  { %1835 = dma.done.wait [#allocation25], 32  }
 0x128   :  { %1836 = vsyncadd [#allocation25], 4294967264 }
 0x129   :  { %1837 = dma.done.wait [#allocation28], 32  }
 0x12a   :  { %1838 = vsyncadd [#allocation28], 4294967264 }
 0x12b   :  { %1839 = dma.done.wait [#allocation31], 16  }
 0x12c   :  { %1840 = vsyncadd [#allocation31], 4294967280  ;;  %v1861_v0 = vmov 0.0|0.0   ;;  %vm1862_vm0 = vmmov 0   ;;  %v1863_v1 = vmov 0.0   ;;  %v354_v2 = vld [vmem:[#allocation14] sm:$0xff] }
 0x12d   :  { %1317 = vmatprep.subr.bf16.mxu1 %v1861_v0  ;;  %1293 = vmatprep.subr.bf16.mxu0 %v1861_v0  ;;  %v355_v3 = vld [vmem:[#allocation14 + $0x8] sm:$0xff]  ;;  %v254_v4 = vld [vmem:[#allocation11] sm:$0xff]  ;;  %v356_v7 = vld [vmem:[#allocation14 + $0x10] sm:$0xff]  ;;  %vm349_vm1 = vcmask 7168   ;;  %vm619_vm3 = vcmask 64512   ;;  %s1866_s15 = smov [#allocation32]  }
 0x12e   :  { %1175 = vmatprep.mubr.msk.f32.mxu1 %vm1862_vm0, %v1863_v1  ;;  %1140 = vmatprep.mubr.msk.f32.mxu0 %vm1862_vm0, %v1863_v1  ;;  %v1318_v5 = vpack.c.bf16 %v355_v3, %v354_v2  ;;  %v255_v6 = vld [vmem:[#allocation11 + $0x8] sm:$0xff]  ;;  %v357_v8 = vld [vmem:[#allocation14 + $0x18] sm:$0xff]  ;;  %v256_v10 = vld [vmem:[#allocation11 + $0x10] sm:$0xff]  ;;  %351 = vst.msk [vmem:[#allocation4] sm:$0xff] %vm349_vm1, %v1863_v1  ;;  %s992_s6 = sshll.u32 %s1866_s15, 4  ;;  %s993_s6 = int_to_ptr.vmem [resolvable:$true] %s992_s6 }
 0x12f   :  { %v1294_v9 = vpack.c.bf16 %v255_v6, %v254_v4  ;;  %v257_v11 = vld [vmem:[#allocation11 + $0x18] sm:$0xff]  ;;  %v1321_v12 = vpack.c.bf16 %v357_v8, %v356_v7  ;;  %v358_v14 = vld [vmem:[#allocation14 + $0x20] sm:$0xff]  ;;  %v359_v15 = vld [vmem:[#allocation14 + $0x28] sm:$0xff]  ;;  %v1864_v4 = vmov -1e+30   ;;  %s1801_s10 = scalar_lea.vmem %s993_s6, 128  ;;  %p1806_p3 = scmp.lt.s32.totalorder %s993_s6, %s993_s6 }
 0x130   :  { %1319 = vmatpush3.bf16.msra.mxu1 %v1318_v5  ;;  %v1297_v13 = vpack.c.bf16 %v257_v11, %v256_v10  ;;  %v258_v16 = vld [vmem:[#allocation11 + $0x20] sm:$0xff]  ;;  %v259_v17 = vld [vmem:[#allocation11 + $0x28] sm:$0xff]  ;;  %v1324_v18 = vpack.c.bf16 %v359_v15, %v358_v14  ;;  %v360_v20 = vld [vmem:[#allocation14 + $0x30] sm:$0xff]  ;;  %350 = vst.msk [vmem:[#allocation3] sm:$0xff] %vm349_vm1, %v1864_v4  ;;  %p1802_p2 = scmp.ne.s32.totalorder %s993_s6, %s1801_s10  ;;  %p1807_p4 = scmp.lt.s32.totalorder %s1801_s10, %s1801_s10 }
 0x131   :  { %1295 = vmatpush3.bf16.msra.mxu0 %v1294_v9  ;;  %1320 = vmatprep.subr.bf16.mxu1 %v1861_v0  ;;  %v1300_v19 = vpack.c.bf16 %v259_v17, %v258_v16  ;;  %v361_v21 = vld [vmem:[#allocation14 + $0x38] sm:$0xff]  ;;  %v260_v22 = vld [vmem:[#allocation11 + $0x30] sm:$0xff]  ;;  %v362_v26 = vld [vmem:[#allocation14 + $0x40] sm:$0xff] }
 0x132   :  { %1296 = vmatprep.subr.bf16.mxu0 %v1861_v0  ;;  %v261_v23 = vld [vmem:[#allocation11 + $0x38] sm:$0xff]  ;;  %v1327_v24 = vpack.c.bf16 %v361_v21, %v360_v20  ;;  %v363_v27 = vld [vmem:[#allocation14 + $0x48] sm:$0xff]  ;;  %v262_v28 = vld [vmem:[#allocation11 + $0x40] sm:$0xff]  ;;  %p1808_p5 = por %p1807_p4, %p1806_p3 }
 0x133   :  { %v1303_v25 = vpack.c.bf16 %v261_v23, %v260_v22  ;;  %v263_v29 = vld [vmem:[#allocation11 + $0x48] sm:$0xff]  ;;  %v1330_v30 = vpack.c.bf16 %v363_v27, %v362_v26  ;;  %v364_v32 = vld [vmem:[#allocation14 + $0x50] sm:$0xff]  ;;  %v365_v33 = vld [vmem:[#allocation14 + $0x58] sm:$0xff] }
 0x134   :  { %1322 = vmatpush3.bf16.msra.mxu1 %v1321_v12  ;;  %v1306_v31 = vpack.c.bf16 %v263_v29, %v262_v28  ;;  %v264_v34 = vld [vmem:[#allocation11 + $0x50] sm:$0xff]  ;;  %v265_v35 = vld [vmem:[#allocation11 + $0x58] sm:$0xff]  ;;  %v1333_v36 = vpack.c.bf16 %v365_v33, %v364_v32  ;;  %v366_v38 = vld [vmem:[#allocation14 + $0x60] sm:$0xff]  ;;  %p1809_p6 = pnand %p1808_p5, %p1802_p2 }
 0x135   :  { %1298 = vmatpush3.bf16.msra.mxu0 %v1297_v13  ;;  %1323 = vmatprep.subr.bf16.mxu1 %v1861_v0  ;;  %v1309_v37 = vpack.c.bf16 %v265_v35, %v264_v34  ;;  %v367_v39 = vld [vmem:[#allocation14 + $0x68] sm:$0xff]  ;;  %v266_v40 = vld [vmem:[#allocation11 + $0x60] sm:$0xff]  ;;  %v368_v44 = vld [vmem:[#allocation14 + $0x70] sm:$0xff] }
 0x136   :  { %1299 = vmatprep.subr.bf16.mxu0 %v1861_v0  ;;  %v267_v41 = vld [vmem:[#allocation11 + $0x68] sm:$0xff]  ;;  %v1336_v42 = vpack.c.bf16 %v367_v39, %v366_v38  ;;  %v369_v45 = vld [vmem:[#allocation14 + $0x78] sm:$0xff]  ;;  %v268_v46 = vld [vmem:[#allocation11 + $0x70] sm:$0xff] }
 0x137   :  { %v1312_v43 = vpack.c.bf16 %v267_v41, %v266_v40  ;;  %v269_v47 = vld [vmem:[#allocation11 + $0x78] sm:$0xff]  ;;  %v1339_v48 = vpack.c.bf16 %v369_v45, %v368_v44  ;;  %v2181_v51 = vld [vmem:[#allocation6] sm:$0xff]  ;;  %v1010_v52 = vld [vmem:[#allocation15] ss:$0 sm:$0xff] }
 0x138   :  { %1325 = vmatpush3.bf16.msra.mxu1 %v1324_v18  ;;  %v1315_v49 = vpack.c.bf16 %v269_v47, %v268_v46  ;;  %v2179_v50 = vld [vmem:[#allocation9] sm:$0xff]  ;;  %v1009_v53 = vld [vmem:[#allocation12] ss:$0 sm:$0xff]  ;;  %v447_v61 = vld [vmem:[#allocation17] sm:$0xff] }
 0x139   :  { %1301 = vmatpush3.bf16.msra.mxu0 %v1300_v19  ;;  %1326 = vmatprep.subr.bf16.mxu1 %v1861_v0  ;;  %v448_v62 = vld [vmem:[#allocation17 + $0x8] sm:$0xff]  ;;  %v449_v63 = vld [vmem:[#allocation17 + $0x10] sm:$0xff]  ;;  %v450_v3 = vld [vmem:[#allocation17 + $0x18] sm:$0xff] }
 0x13a   :  { %1302 = vmatprep.subr.bf16.mxu0 %v1861_v0  ;;  %v1342_v2 = vpack.c.bf16 %v448_v62, %v447_v61  ;;  %v1345_v5 = vpack.c.bf16 %v450_v3, %v449_v63  ;;  %v451_v6 = vld [vmem:[#allocation17 + $0x20] sm:$0xff]  ;;  %v452_v7 = vld [vmem:[#allocation17 + $0x28] sm:$0xff]  ;;  %v453_v9 = vld [vmem:[#allocation17 + $0x30] sm:$0xff] }
 0x13b   :  { %v1348_v8 = vpack.c.bf16 %v452_v7, %v451_v6  ;;  %v454_v10 = vld [vmem:[#allocation17 + $0x38] sm:$0xff]  ;;  %v455_v12 = vld [vmem:[#allocation17 + $0x40] sm:$0xff]  ;;  %v456_v13 = vld [vmem:[#allocation17 + $0x48] sm:$0xff] }
 0x13c   :  { %1328 = vmatpush3.bf16.msra.mxu1 %v1327_v24  ;;  %v1351_v11 = vpack.c.bf16 %v454_v10, %v453_v9  ;;  %v1354_v14 = vpack.c.bf16 %v456_v13, %v455_v12  ;;  %v457_v15 = vld [vmem:[#allocation17 + $0x50] sm:$0xff]  ;;  %v458_v16 = vld [vmem:[#allocation17 + $0x58] sm:$0xff]  ;;  %v459_v18 = vld [vmem:[#allocation17 + $0x60] sm:$0xff]  ;;  %v611_v24 = vlaneseq }
 0x13d   :  { %1304 = vmatpush3.bf16.msra.mxu0 %v1303_v25  ;;  %1329 = vmatprep.subr.bf16.mxu1 %v1861_v0  ;;  %v1357_v17 = vpack.c.bf16 %v458_v16, %v457_v15  ;;  %v460_v19 = vld [vmem:[#allocation17 + $0x68] sm:$0xff]  ;;  %v461_v21 = vld [vmem:[#allocation17 + $0x70] sm:$0xff]  ;;  %v462_v22 = vld [vmem:[#allocation17 + $0x78] sm:$0xff] }
 0x13e   :  { %1305 = vmatprep.subr.bf16.mxu0 %v1861_v0  ;;  %v1360_v20 = vpack.c.bf16 %v460_v19, %v459_v18  ;;  %v1363_v23 = vpack.c.bf16 %v462_v22, %v461_v21  ;;  %v2208_v25 = vand.u32 127, %v611_v24  ;;  %v1011_v35 = vld [vmem:[#allocation18] ss:$0 sm:$0xff]  ;;  %v635_v46 = vld [vmem:[#allocation4] sm:$0xff]  ;;  %v771_v62 = vld [vmem:[#allocation20 + $0x10] sm:$0xff] }
 0x13f   :  { %v770_v61 = vld [vmem:[#allocation20 + $0x8] sm:$0xff]  ;;  %v773_v4 = vld [vmem:[#allocation20 + $0x20] sm:$0xff]  ;;  %v776_v12 = vld [vmem:[#allocation20 + $0x38] sm:$0xff] }
 0x140   :  { %1331 = vmatpush3.bf16.msra.mxu1 %v1330_v30  ;;  %vm616_vm2 = vcmp.lt.s32.totalorder %v2208_v25, 8  ;;  %v1865_v30 = vmov 0   ;;  %vm745_vm4 = vcmp.lt.s32.totalorder %v2208_v25, 32  ;;  %v778_v15 = vld [vmem:[#allocation20 + $0x48] sm:$0xff]  ;;  %v779_v16 = vld [vmem:[#allocation20 + $0x50] sm:$0xff]  ;;  %v780_v18 = vld [vmem:[#allocation20 + $0x58] sm:$0xff] }
 0x141   :  { %1307 = vmatpush3.bf16.msra.mxu0 %v1306_v31  ;;  %1332 = vmatprep.subr.bf16.mxu1 %v1861_v0  ;;  %v618_v31 = vld [vmem:[#allocation3] sm:$0xff]  ;;  %v1381_v19 = vpack.c.bf16 %v780_v18, %v779_v16  ;;  %v782_v21 = vld [vmem:[#allocation20 + $0x68] sm:$0xff] }
 0x142   :  { %1308 = vmatprep.subr.bf16.mxu0 %v1861_v0  ;;  %1437 = vset.pattern.permute.xlu0 %v1865_v30  ;;  %v784_v24 = vld [vmem:[#allocation20 + $0x78] sm:$0xff] }
 0x143   :  { %1438 = vset.pattern.permute.xlu1 %v1865_v30 }
 0x144   :  { %1334 = vmatpush3.bf16.msra.mxu1 %v1333_v36 }
 0x145   :  { %1310 = vmatpush3.bf16.msra.mxu0 %v1309_v37  ;;  %1335 = vmatprep.subr.bf16.mxu1 %v1861_v0 }
 0x146   :  { %1311 = vmatprep.subr.bf16.mxu0 %v1861_v0 }
 0x148   :  { %1337 = vmatpush3.bf16.msra.mxu1 %v1336_v42 }
 0x149   :  { %1313 = vmatpush3.bf16.msra.mxu0 %v1312_v43  ;;  %1338 = vmatprep.subr.bf16.mxu1 %v1861_v0 }
 0x14a   :  { %1314 = vmatprep.subr.bf16.mxu0 %v1861_v0 }
 0x14c   :  { %1340 = vmatpush3.bf16.msra.mxu1 %v1339_v48 }
 0x14d   :  { %1316 = vmatpush3.bf16.msra.mxu0 %v1315_v49  ;;  %1213 = vmatprep.subr.mxu1 %v1863_v1 }
 0x14e   :  { %1341 = vmatprep.subr.bf16.mxu0 %v1861_v0 }
 0x14f   :  { %1176 = vmatmul.mubr.f32.vlgmr.msra.gmra.mrb[0].mxu1 %v2179_v50 }
 0x150   :  { %1141 = vmatmul.mubr.f32.vlgmr.msra.gmra.mrb[0].mxu0 %v2181_v51  ;;  %1215 = vmatprep.mubr.msk.f32.mxu1 %vm1862_vm0, %v1863_v1 }
 0x151   :  { %1210 = vmatprep.mubr.msk.f32.mxu0 %vm1862_vm0, %v1863_v1  ;;  %1343 = vmatpush3.bf16.msra.mxu0 %v1342_v2  ;;  %v772_v2 = vld [vmem:[#allocation20 + $0x18] sm:$0xff] }
 0x152   :  { %1344 = vmatprep.subr.bf16.mxu0 %v1861_v0  ;;  %v1369_v3 = vpack.c.bf16 %v772_v2, %v771_v62  ;;  %v1016_v2 = vld [vmem:[#allocation24] ss:$0 sm:$0xff] }
 0x155   :  { %1346 = vmatpush3.bf16.msra.mxu0 %v1345_v5  ;;  %v774_v5 = vld [vmem:[#allocation20 + $0x28] sm:$0xff] }
 0x156   :  { %1347 = vmatprep.subr.bf16.mxu0 %v1861_v0  ;;  %v1372_v6 = vpack.c.bf16 %v774_v5, %v773_v4 }
 0x159   :  { %1349 = vmatpush3.bf16.msra.mxu0 %v1348_v8 }
 0x15a   :  { %1350 = vmatprep.subr.bf16.mxu0 %v1861_v0 }
 0x15d   :  { %1352 = vmatpush3.bf16.msra.mxu0 %v1351_v11  ;;  %v775_v11 = vld [vmem:[#allocation20 + $0x30] sm:$0xff] }
 0x15e   :  { %1353 = vmatprep.subr.bf16.mxu0 %v1861_v0  ;;  %v1375_v13 = vpack.c.bf16 %v776_v12, %v775_v11 }
 0x161   :  { %1355 = vmatpush3.bf16.msra.mxu0 %v1354_v14  ;;  %v777_v14 = vld [vmem:[#allocation20 + $0x40] sm:$0xff] }
 0x162   :  { %1356 = vmatprep.subr.bf16.mxu0 %v1861_v0 }
 0x165   :  { %1358 = vmatpush3.bf16.msra.mxu0 %v1357_v17  ;;  %v1378_v17 = vpack.c.bf16 %v778_v15, %v777_v14  ;;  %v1017_v15 = vld [vmem:[#allocation29] ss:$0 sm:$0xff] }
 0x166   :  { %1359 = vmatprep.subr.bf16.mxu0 %v1861_v0 }
 0x169   :  { %1361 = vmatpush3.bf16.msra.mxu0 %v1360_v20  ;;  %v781_v20 = vld [vmem:[#allocation20 + $0x60] sm:$0xff] }
 0x16a   :  { %1362 = vmatprep.subr.bf16.mxu0 %v1861_v0  ;;  %v1384_v22 = vpack.c.bf16 %v782_v21, %v781_v20 }
 0x16d   :  { %1364 = vmatpush3.bf16.msra.mxu0 %v1363_v23  ;;  %v783_v23 = vld [vmem:[#allocation20 + $0x70] sm:$0xff] }
 0x16e   :  { %1389 = vmatprep.subr.bf16.mxu0 %v1861_v0 }
 0x170   :  { %1211 = vmatmul.mubr.f32.vlgmr.msra.gmra.mrb[2].mxu0 %v2179_v50 }
 0x171   :  { %1290 = vmatprep.mubr.msk.f32.mxu0 %vm1862_vm0, %v1863_v1 }
 0x222   :  { %v443_v54 = vpop.f32.mrb[0].mxu1 }
 0x223   :  { %v444_v55 = vadd.f32 %v1010_v52, %v443_v54  ;;  %v343_v56 = vpop.f32.mrb[0].mxu0  ;;  %v1177_v57 = vpop.f32.mrb[1].mxu1 }
 0x224   :  { %v344_v58 = vadd.f32 %v1009_v53, %v343_v56  ;;  %v1142_v59 = vpop.f32.mrb[1].mxu0 }
 0x225   :  { %1214 = vmatpush3.xpose.msra.mxu1 %v444_v55 }
 0x226   :  { %v347_v60 = vmul.f32 0.17677669, %v344_v58  ;;  %1218 = vmatprep.subr.mxu1 %v1863_v1 }
 0x228   :  { %1216 = vmatmul.mubr.f32.vlgmr.msra.gmra.mrb[2].mxu1 %v347_v60  ;;  %v769_v60 = vld [vmem:[#allocation20] sm:$0xff] }
 0x229   :  { %1220 = vmatprep.mubr.msk.f32.mxu1 %vm1862_vm0, %v1863_v1  ;;  %v1366_v63 = vpack.c.bf16 %v770_v61, %v769_v60  ;;  %v1015_v60 = vld [vmem:[#allocation21] ss:$0 sm:$0xff] }
 0x243   :  { %v536_v36 = vpop.f32.mrb[2].mxu0 }
 0x244   :  { %v537_v37 = vadd.f32 %v1011_v35, %v536_v36  ;;  %v1212_v38 = vpop.f32.mrb[3].mxu0  ;;  %v869_v36 = vld [vmem:[#allocation23 + $0x30] sm:$0xff] }
 0x246   :  { %1219 = vmatpush3.msra.mxu1 %v537_v37  ;;  %v870_v37 = vld [vmem:[#allocation23 + $0x38] sm:$0xff] }
 0x247   :  { %1365 = vmatprep.subr.bf16.mxu1 %v1861_v0  ;;  %v1399_v38 = vpack.c.bf16 %v870_v37, %v869_v36 }
 0x2fb   :  { %v607_v26 = vpop.f32.mrb[2].mxu1 }
 0x2fc   :  { %v617_v27 = vsel %vm616_vm2, %v607_v26, -1e+30  ;;  %v1217_v28 = vpop.f32.mrb[3].mxu1  ;;  %v1387_v26 = vpack.c.bf16 %v784_v24, %v783_v23 }
 0x2fd   :  { %v620_v29 = vsel %vm619_vm3, %v617_v27, -inf  ;;  %v864_v28 = vld [vmem:[#allocation23 + $0x8] sm:$0xff] }
 0x2fe   :  { %621 = vmax.xlane.f32.xlu0 %v620_v29  ;;  %v865_v29 = vld [vmem:[#allocation23 + $0x10] sm:$0xff] }
 0x38b   :  { %v622_v32 = vpop.xlane.xlu0 %621 }
 0x38c   :  { %v623_v33 = vmax.f32 %v618_v31, %v622_v32 }
 0x38e   :  { %v624_v34 = vsub.f32 %v618_v31, %v623_v33  ;;  %725 = vst.msk [vmem:[#allocation3] sm:$0xff] %vm349_vm1, %v623_v33  ;;  %629 = vperm.xlu0 %1437, %v623_v33   ;;  %v866_v31 = vld [vmem:[#allocation23 + $0x18] sm:$0xff]  ;;  %v867_v33 = vld [vmem:[#allocation23 + $0x20] sm:$0xff] }
 0x38f   :  { %v1393_v32 = vpack.c.bf16 %v866_v31, %v865_v29 }
 0x390   :  { %v625_v44 = vmul.f32 1.442695, %v624_v34  ;;  %v868_v34 = vld [vmem:[#allocation23 + $0x28] sm:$0xff] }
 0x391   :  { %v1396_v35 = vpack.c.bf16 %v868_v34, %v867_v33 }
 0x40d   :  { %v630_v39 = vpop.permute.xlu0 %629 }
 0x40e   :  { %v632_v40 = vsub.f32 %v617_v27, %v630_v39  ;;  %v863_v27 = vld [vmem:[#allocation23] sm:$0xff] }
 0x40f   :  { %v1390_v30 = vpack.c.bf16 %v864_v28, %v863_v27  ;;  %v871_v39 = vld [vmem:[#allocation23 + $0x40] sm:$0xff] }
 0x410   :  { %v633_v41 = vmul.f32 1.442695, %v632_v40  ;;  %v872_v40 = vld [vmem:[#allocation23 + $0x48] sm:$0xff] }
 0x411   :  { %1391 = vmatpush3.bf16.msra.mxu0 %v1390_v30 }
 0x412   :  { %1439 = vpow2.f32 %v633_v41  ;;  %1392 = vmatprep.subr.bf16.mxu0 %v1861_v0  ;;  %v1402_v41 = vpack.c.bf16 %v872_v40, %v871_v39 }
 0x413   :  { %1441 = vpow2.f32 %v625_v44 }
 0x415   :  { %1394 = vmatpush3.bf16.msra.mxu0 %v1393_v32 }
 0x416   :  { %1395 = vmatprep.subr.bf16.mxu0 %v1861_v0 }
 0x419   :  { %1397 = vmatpush3.bf16.msra.mxu0 %v1396_v35 }
 0x41a   :  { %1398 = vmatprep.subr.bf16.mxu0 %v1861_v0 }
 0x41c   :  { %v1440_v42 = vpop.eup %1439 }
 0x41d   :  { %1221 = vmatmul.mubr.msk.f32.vlgmr.msra.gmra.mrb[4].mxu1 %vm619_vm3, %v1440_v42  ;;  %v637_v43 = vsel %vm619_vm3, %v1440_v42, 0.0  ;;  %v1442_v45 = vpop.eup %1441  ;;  %1400 = vmatpush3.bf16.msra.mxu0 %v1399_v38  ;;  %v873_v42 = vld [vmem:[#allocation23 + $0x50] sm:$0xff] }
 0x41e   :  { %638 = vadd.xlane.f32.xlu1 %v637_v43  ;;  %1255 = vmatprep.mubr.msk.f32.mxu1 %vm1862_vm0, %v1863_v1  ;;  %v636_v47 = vmul.f32 %v1442_v45, %v635_v46  ;;  %v874_v43 = vld [vmem:[#allocation23 + $0x58] sm:$0xff]  ;;  %v876_v46 = vld [vmem:[#allocation23 + $0x68] sm:$0xff] }
 0x41f   :  { %1367 = vmatpush3.bf16.msra.mxu1 %v1366_v63  ;;  %1401 = vmatprep.subr.bf16.mxu0 %v1861_v0  ;;  %v1405_v44 = vpack.c.bf16 %v874_v43, %v873_v42 }
 0x420   :  { %1368 = vmatprep.subr.bf16.mxu1 %v1861_v0 }
 0x421   :  { %1403 = vmatpush3.bf16.msra.mxu0 %v1402_v41 }
 0x422   :  { %1404 = vmatprep.subr.bf16.mxu0 %v1861_v0 }
 0x423   :  { %1370 = vmatpush3.bf16.msra.mxu1 %v1369_v3 }
 0x424   :  { %1371 = vmatprep.subr.bf16.mxu1 %v1861_v0 }
 0x425   :  { %1406 = vmatpush3.bf16.msra.mxu0 %v1405_v44 }
 0x426   :  { %1407 = vmatprep.subr.bf16.mxu0 %v1861_v0 }
 0x427   :  { %1373 = vmatpush3.bf16.msra.mxu1 %v1372_v6 }
 0x428   :  { %1374 = vmatprep.subr.bf16.mxu1 %v1861_v0 }
 0x42b   :  { %1376 = vmatpush3.bf16.msra.mxu1 %v1375_v13 }
 0x42c   :  { %1377 = vmatprep.subr.bf16.mxu1 %v1861_v0 }
 0x42f   :  { %646 = vperm.xlu1 %1438, %v1442_v45   ;;  %1379 = vmatpush3.bf16.msra.mxu1 %v1378_v17  ;;  %v875_v45 = vld [vmem:[#allocation23 + $0x60] sm:$0xff]  ;;  %v1018_v17 = vld [vmem:[#allocation30] ss:$0 sm:$0xff] }
 0x430   :  { %1380 = vmatprep.subr.bf16.mxu1 %v1861_v0 }
 0x433   :  { %1382 = vmatpush3.bf16.msra.mxu1 %v1381_v19 }
 0x434   :  { %1383 = vmatprep.subr.bf16.mxu1 %v1861_v0 }
 0x437   :  { %1385 = vmatpush3.bf16.msra.mxu1 %v1384_v22 }
 0x438   :  { %1386 = vmatprep.subr.bf16.mxu1 %v1861_v0 }
 0x43b   :  { %1388 = vmatpush3.bf16.msra.mxu1 %v1387_v26 }
 0x4ab   :  { %v639_v48 = vpop.xlane.xlu1 %638 }
 0x4ac   :  { %v640_v49 = vadd.f32 %v639_v48, %v636_v47  ;;  %v1408_v47 = vpack.c.bf16 %v876_v46, %v875_v45 }
 0x4ae   :  { %642 = vst.msk [vmem:[#allocation4] sm:$0xff] %vm349_vm1, %v640_v49  ;;  %1409 = vmatpush3.bf16.msra.mxu0 %v1408_v47 }
 0x4af   :  { %v647_v55 = vpop.permute.xlu1 %646  ;;  %1410 = vmatprep.subr.bf16.mxu0 %v1861_v0 }
 0x4b0   :  { %v649_v56 = vmul.f32 0.0, %v647_v55  ;;  %v1014_v55 = vld [vmem:[#allocation27] ss:$0 sm:$0xff] }
 0x4b5   :  { %v731_v50 = vld [vmem:[#allocation4] sm:$0xff] }
 0x4b6   :  { %1443 = vrcp.f32 %v731_v50 }
 0x4c0   :  { %v1444_v52 = vpop.eup %1443 }
 0x4c1   :  { %735 = vperm.xlu1 %1438, %v1444_v52  }
 0x4f0   :  { %v719_v53 = vpop.f32.mrb[4].mxu1 }
 0x4f1   :  { %v1222_v54 = vpop.f32.mrb[5].mxu1  ;;  %v723_v57 = vadd.f32 %v719_v53, %v649_v56  ;;  %v1013_v53 = vld [vmem:[#allocation26] ss:$0 sm:$0xff] }
 0x540   :  { %v736_v1 = vpop.permute.xlu1 %735 }
 0x541   :  { %v738_v58 = vmul.f32 %v736_v1, %v723_v57  ;;  %v877_v1 = vld [vmem:[#allocation23 + $0x70] sm:$0xff] }
 0x543   :  { %v739_v59 = vadd.f32 %v738_v58, %v2181_v51  ;;  %v878_v58 = vld [vmem:[#allocation23 + $0x78] sm:$0xff] }
 0x545   :  { %742 = vadd.xlane.f32.xlu1 %v739_v59 }
 0x5d2   :  { %v743_v51 = vpop.xlane.xlu1 %742 }
 0x5d3   :  { %v744_v7 = vmul.f32 0.03125, %v743_v51 }
 0x5d5   :  { %v2224_v8 = vsub.f32 %v739_v59, %v744_v7  ;;  %v1411_v59 = vpack.c.bf16 %v878_v58, %v877_v1 }
 0x5d7   :  { %v747_v9 = vsel %vm745_vm4, %v2224_v8, 0.0  ;;  %1412 = vmatpush3.bf16.msra.mxu0 %v1411_v59 }
 0x5d8   :  { %v748_v10 = vmul.f32 %v747_v9, %v747_v9 }
 0x5da   :  { %749 = vadd.xlane.f32.xlu0 %v748_v10 }
 0x667   :  { %v750_v48 = vpop.xlane.xlu0 %749 }
 0x668   :  { %v751_v49 = vmul.f32 0.03125, %v750_v48 }
 0x66a   :  { %v752_v50 = vadd.f32 1e-05, %v751_v49 }
 0x66c   :  { %1445 = vrsqrt.f32 %v752_v50 }
 0x676   :  { %v1446_v52 = vpop.eup %1445 }
 0x677   :  { %v754_v54 = vmul.f32 %v1446_v52, %v2224_v8 }
 0x679   :  { %v761_v56 = vmul.f32 %v1013_v53, %v754_v54 }
 0x67b   :  { %v768_v57 = vadd.f32 %v1014_v55, %v761_v56 }
 0x67d   :  { %1256 = vmatmul.mubr.f32.vlgmr.msra.gmra.mrb[6].mxu1 %v768_v57 }
 0x750   :  { %v858_v61 = vpop.f32.mrb[6].mxu1 }
 0x751   :  { %v859_v62 = vadd.f32 %v1015_v60, %v858_v61  ;;  %v1257_v0 = vpop.f32.mrb[7].mxu1 }
 0x753   :  { %v862_v63 = vmax.f32 %v859_v62, 0.0 }
 0x755   :  { %1291 = vmatmul.mubr.f32.vlgmr.msra.gmra.mrb[4].mxu0 %v862_v63 }
 0x828   :  { %v952_v3 = vpop.f32.mrb[4].mxu0 }
 0x829   :  { %v953_v4 = vadd.f32 %v1016_v2, %v952_v3  ;;  %v1292_v5 = vpop.f32.mrb[5].mxu0 }
 0x82b   :  { %v956_v6 = vadd.f32 %v953_v4, %v768_v57 }
 0x82d   :  { %959 = vadd.xlane.f32.xlu1 %v956_v6 }
 0x8ba   :  { %v960_v51 = vpop.xlane.xlu1 %959 }
 0x8bb   :  { %v961_v7 = vmul.f32 0.03125, %v960_v51 }
 0x8bd   :  { %v962_v8 = vsub.f32 %v956_v6, %v961_v7 }
 0x8bf   :  { %v963_v9 = vsel %vm745_vm4, %v962_v8, 0.0 }
 0x8c0   :  { %v964_v10 = vmul.f32 %v963_v9, %v963_v9 }
 0x8c2   :  { %965 = vadd.xlane.f32.xlu1 %v964_v10 }
 0x94f   :  { %v966_v11 = vpop.xlane.xlu1 %965 }
 0x950   :  { %v967_v12 = vmul.f32 0.03125, %v966_v11 }
 0x952   :  { %v968_v13 = vadd.f32 1e-05, %v967_v12 }
 0x954   :  { %1447 = vrsqrt.f32 %v968_v13 }
 0x95e   :  { %v1448_v14 = vpop.eup %1447 }
 0x95f   :  { %v970_v16 = vmul.f32 %v1448_v14, %v962_v8 }
 0x961   :  { %v977_v18 = vmul.f32 %v1017_v15, %v970_v16 }
 0x963   :  { %v984_v19 = vadd.f32 %v1018_v17, %v977_v18 }
 0x965   :  { %985 = vst [vmem:[#allocation32] sm:$0xff] %v984_v19 }
 0x966   :  { %1812 = shalt.err (!%p1809_p6)
}
 0x967   :  { %s1813_s13 = scalar_lea.hbm %s2271_s16, 128 }
 0x968   :  { %p1814_p7 = scmp.ne.s32.totalorder %s2271_s16, %s1813_s13  ;;  %p1817_p8 = scmp.lt.u32.totalorder %s1813_s13, %s2271_s16 }
 0x96a   :  { %p1819_p9 = pnand %p1817_p8, %p1814_p7 }
 0x96c   :  { %1822 = shalt.err (!%p1819_p9)
}
 0x96d   :  { %995 = dma.vmem_to_hbm [thread:$0]  %s993_s6, 128, %s2271_s16, [#allocation8]  }
 0x96e   :  { %1841 = dma.done.wait [#allocation8], 128  }
 0x96f   :  { %1842 = vsyncadd [#allocation8], 4294967168 }
 0x970   :  { %999 = vsyncpa [#allocation7], 1 }
 0x971   :  { %1000 = vsyncpa [#allocation10], 1 }
 0x972   :  { %1001 = vsyncpa [#allocation13], 1 }
 0x973   :  { %1002 = vsyncpa [#allocation16], 1 }
 0x974   :  { %1003 = vsyncpa [#allocation19], 1 }
 0x975   :  { %1004 = vsyncpa [#allocation22], 1 }
 0x976   :  { %1005 = vsyncpa [#allocation25], 1 }
 0x977   :  { %1006 = vsyncpa [#allocation28], 1 }
 0x978   :  { %1007 = vsyncpa [#allocation31], 1 }
 0x979   :  { %1008 = vsyncpa [#allocation8], 1 }

</bundles_post_ra>
